<compile_context>
chip_gen: v5e
topology: v5e:2x2
jax: 0.10.0
libtpu: 0.0.40
codegen_flags: <defaults>
</compile_context>

<pallas_src>
import jax
import jax.numpy as jnp
from jax.experimental import pallas as pl
from jax.experimental.pallas import tpu as pltpu

_EPS = 1e-5          # nn.BatchNorm2d default eps
_NEG_SLOPE = 0.01    # nn.LeakyReLU default negative_slope


def _leaky_relu(x):
    return jnp.where(x >= 0, x, _NEG_SLOPE * x)


def _conv3x3_same(v, w_ref, pad_ref):
    """3x3 'same' (zero-padded) conv of v:(H2,W2,Cin) with w_ref:(3,3,Cin,Cout).

    pad_ref: VMEM scratch (H2+2, Wp, Cin) with Wp a multiple of 8 and Wp >= W2+2.
    Rows 1..H2 hold [v | zeros] (W zero-padding kept at the tail so the store and all
    slices are sublane-tile aligned); rows 0 / H2+1 stay zero (H padding). Column
    shifts of the stencil are realized with pltpu.roll so the compute slice is always
    the aligned [0:W2]. Returns the (H2*W2, Cout) fp32 conv result (no bias).
    """
    h2, w2, cin = v.shape
    cout = w_ref.shape[-1]
    wp = pad_ref.shape[1]

    pad_ref[...] = jnp.zeros_like(pad_ref)
    pad_ref[pl.ds(1, h2), pl.ds(0, w2), :] = v
    a = pad_ref[...]                                        # (h2+2, wp, cin)

    acc = jnp.zeros((h2 * w2, cout), jnp.float32)
    for dx in range(3):
        if dx == 1:
            ax = a
        else:
            # Bring the needed (possibly zero-pad) column into position 0 (XLU roll).
            ax = pltpu.roll(a, shift=(1 - dx) % wp, axis=1)
        for dy in range(3):
            win = ax[dy:dy + h2, 0:w2, :]                   # (h2, w2, cin), aligned
            acc = acc + jnp.dot(win.reshape(h2 * w2, cin), w_ref[dy, dx],
                                preferred_element_type=jnp.float32)
    return acc


def _pool_conv_kernel(xwin_ref, w_ref, b_ref, out_ref, sum_ref, sq_ref, pad_ref):
    """MaxPool2d(2) + Conv1(3x3, pad=1) + bias + partial BN stats, one batch element."""
    xw = xwin_ref[0]                                        # (h2, 4, w2, cin)
    pooled = jnp.maximum(jnp.maximum(xw[:, 0], xw[:, 1]),
                         jnp.maximum(xw[:, 2], xw[:, 3]))   # (h2, w2, cin)
    acc = _conv3x3_same(pooled, w_ref, pad_ref)             # (m, cout), f32
    y = acc + b_ref[...]
    out_ref[0] = y.astype(out_ref.dtype)
    cout = y.shape[1]
    sum_ref[...] = jnp.sum(y, axis=0).reshape(1, 1, cout)       # partial BN1 sum
    sq_ref[...] = jnp.sum(y * y, axis=0).reshape(1, 1, cout)    # partial BN1 sumsq


def _bn_act_conv_kernel(y_ref, scale_ref, shift_ref, w_ref, b_ref,
                        out_ref, sum_ref, sq_ref, pad_ref):
    """BN1 (folded affine) + LeakyReLU + Dropout(0) + Conv2 + bias + partial BN2 stats."""
    h = y_ref[0] * scale_ref[...] + shift_ref[...]          # (m, c)
    h = _leaky_relu(h)
    # Dropout(p=0.0) == identity.
    # TODO(synk): for dropout_p > 0 use pltpu.prng_seed + pltpu.prng_random_bits mask.
    h2 = pad_ref.shape[0] - 2
    w2 = h.shape[0] // h2
    acc = _conv3x3_same(h.reshape(h2, w2, h.shape[1]), w_ref, pad_ref)
    y = acc + b_ref[...]
    out_ref[0] = y.astype(out_ref.dtype)
    cout = y.shape[1]
    sum_ref[...] = jnp.sum(y, axis=0).reshape(1, 1, cout)
    sq_ref[...] = jnp.sum(y * y, axis=0).reshape(1, 1, cout)


def _bn_act_kernel(y_ref, scale_ref, shift_ref, out_ref):
    """BN2 (folded affine) + LeakyReLU."""
    h = y_ref[0] * scale_ref[...] + shift_ref[...]
    out_ref[0] = _leaky_relu(h).astype(out_ref.dtype)


def _fold_bn(sums, sqs, gamma, beta, n):
    """Fold biased batch stats (from per-block partial sums) into scale/shift."""
    mean = jnp.sum(sums, axis=(0, 1)) / n
    var = jnp.maximum(jnp.sum(sqs, axis=(0, 1)) / n - mean * mean, 0.0)
    inv = gamma / jnp.sqrt(var + _EPS)
    cout = gamma.shape[0]
    return inv.reshape(1, cout), (beta - mean * inv).reshape(1, cout)


@jax.jit
def down_block_forward(x, params):
    """x: (B, C_in, H, W) NCHW like the PyTorch module. Returns (B, C_out, H//2, W//2)."""
    B, cin, H, W = x.shape
    h2, w2 = H // 2, W // 2
    m = h2 * w2
    cout = params["w1"].shape[-1]
    wp = ((w2 + 2 + 7) // 8) * 8      # padded-width scratch rounded to the sublane tile

    # NCHW -> NHWC with the 2x2 pooling window exposed as its own (major) axis so the
    # in-kernel max is pure VPU work on full vregs. Pure layout plumbing in XLA.
    xwin = (jnp.transpose(x, (0, 2, 3, 1))
            .reshape(B, h2, 2, w2, 2, cin)
            .transpose(0, 1, 2, 4, 3, 5)
            .reshape(B, h2, 4, w2, cin))

    cparams = pltpu.CompilerParams(dimension_semantics=("parallel",))
    stat_shape = jax.ShapeDtypeStruct((B, 1, cout), jnp.float32)
    stat_spec = pl.BlockSpec((1, 1, cout), lambda b: (b, 0, 0))

    # ---- MaxPool2d(2) + Conv1 fused; emits partial BN1 stats ----
    y1, s1, q1 = pl.pallas_call(
        _pool_conv_kernel,
        out_shape=(jax.ShapeDtypeStruct((B, m, cout), jnp.float32),
                   stat_shape, stat_shape),
        grid_spec=pltpu.PrefetchScalarGridSpec(
            num_scalar_prefetch=0,
            grid=(B,),
            in_specs=[
                pl.BlockSpec((1, h2, 4, w2, cin), lambda b: (b, 0, 0, 0, 0)),
                pl.BlockSpec((3, 3, cin, cout), lambda b: (0, 0, 0, 0)),   # resident
                pl.BlockSpec((1, cout), lambda b: (0, 0)),                 # resident
            ],
            out_specs=[pl.BlockSpec((1, m, cout), lambda b: (b, 0, 0)),
                       stat_spec, stat_spec],
            scratch_shapes=[pltpu.VMEM((h2 + 2, wp, cin), jnp.float32)],
        ),
        compiler_params=cparams,
    )(xwin, params["w1"], params["b1"])

    # ---- BatchNorm1 (training mode, biased variance) from partial sums only ----
    scale1, shift1 = _fold_bn(s1, q1, params["gamma1"], params["beta1"], B * m)

    # ---- BN1 + LeakyReLU + Dropout(0) + Conv2 fused; emits partial BN2 stats ----
    y2, s2, q2 = pl.pallas_call(
        _bn_act_conv_kernel,
        out_shape=(jax.ShapeDtypeStruct((B, m, cout), jnp.float32),
                   stat_shape, stat_shape),
        grid_spec=pltpu.PrefetchScalarGridSpec(
            num_scalar_prefetch=0,
            grid=(B,),
            in_specs=[
                pl.BlockSpec((1, m, cout), lambda b: (b, 0, 0)),
                pl.BlockSpec((1, cout), lambda b: (0, 0)),                 # resident
                pl.BlockSpec((1, cout), lambda b: (0, 0)),                 # resident
                pl.BlockSpec((3, 3, cout, cout), lambda b: (0, 0, 0, 0)),  # resident
                pl.BlockSpec((1, cout), lambda b: (0, 0)),                 # resident
            ],
            out_specs=[pl.BlockSpec((1, m, cout), lambda b: (b, 0, 0)),
                       stat_spec, stat_spec],
            scratch_shapes=[pltpu.VMEM((h2 + 2, wp, cout), jnp.float32)],
        ),
        compiler_params=cparams,
    )(y1, scale1, shift1, params["w2"], params["b2"])

    # ---- BatchNorm2 stats from partial sums only ----
    scale2, shift2 = _fold_bn(s2, q2, params["gamma2"], params["beta2"], B * m)

    # ---- BN2 + LeakyReLU ----
    out = pl.pallas_call(
        _bn_act_kernel,
        out_shape=jax.ShapeDtypeStruct((B, m, cout), jnp.float32),
        grid_spec=pltpu.PrefetchScalarGridSpec(
            num_scalar_prefetch=0,
            grid=(B,),
            in_specs=[
                pl.BlockSpec((1, m, cout), lambda b: (b, 0, 0)),
                pl.BlockSpec((1, cout), lambda b: (0, 0)),
                pl.BlockSpec((1, cout), lambda b: (0, 0)),
            ],
            out_specs=pl.BlockSpec((1, m, cout), lambda b: (b, 0, 0)),
        ),
        compiler_params=cparams,
    )(y2, scale2, shift2)

    # Back to NCHW like the PyTorch module.
    return jnp.transpose(out.reshape(B, h2, w2, cout), (0, 3, 1, 2))


# --------------------------- parameters & reference ---------------------------

def _init_torch_style_params(key, cin, cout):
    """Deterministic params mimicking PyTorch default inits, in torch layouts."""
    k1, k2 = jax.random.split(key, 2)

    def conv_init(k, ci, co):
        kw, kb = jax.random.split(k)
        bound = 1.0 / (ci * 9) ** 0.5        # nn.Conv2d: U(-1/sqrt(fan_in), 1/sqrt(fan_in))
        w = jax.random.uniform(kw, (co, ci, 3, 3), jnp.float32, -bound, bound)
        b = jax.random.uniform(kb, (co,), jnp.float32, -bound, bound)
        return w, b

    w1, b1 = conv_init(k1, cin, cout)
    w2, b2 = conv_init(k2, cout, cout)
    ones = jnp.ones((cout,), jnp.float32)    # nn.BatchNorm2d default gamma
    zeros = jnp.zeros((cout,), jnp.float32)  # nn.BatchNorm2d default beta
    return dict(w1=w1, b1=b1, gamma1=ones, beta1=zeros,
                w2=w2, b2=b2, gamma2=ones, beta2=zeros)


def prepare_params(tp):
    """One-time layout prep OUTSIDE jit: conv weights -> (3,3,Cin,Cout), biases -> (1,C)."""
    cout = tp["w1"].shape[0]
    return dict(
        w1=jnp.transpose(tp["w1"], (2, 3, 1, 0)), b1=tp["b1"].reshape(1, cout),
        w2=jnp.transpose(tp["w2"], (2, 3, 1, 0)), b2=tp["b2"].reshape(1, cout),
        gamma1=tp["gamma1"], beta1=tp["beta1"],
        gamma2=tp["gamma2"], beta2=tp["beta2"],
    )


def _reference_downblock(x, tp):
    """Pure-JAX reference mirroring the PyTorch DownBlock forward (training-mode BN)."""
    B, C, H, W = x.shape
    xp = x.reshape(B, C, H // 2, 2, W // 2, 2).max(axis=(3, 5))   # MaxPool2d(2)

    def conv_bn_lrelu(h, w, b, gamma, beta):
        h = jax.lax.conv_general_dilated(
            h, w, window_strides=(1, 1), padding=((1, 1), (1, 1)),
            dimension_numbers=("NCHW", "OIHW", "NCHW"),
            precision=jax.lax.Precision.HIGHEST) + b[None, :, None, None]
        mean = h.mean(axis=(0, 2, 3), keepdims=True)
        var = h.var(axis=(0, 2, 3), keepdims=True)
        h = (h - mean) / jnp.sqrt(var + _EPS)
        h = gamma[None, :, None, None] * h + beta[None, :, None, None]
        return jnp.where(h >= 0, h, _NEG_SLOPE * h)

    h = conv_bn_lrelu(xp, tp["w1"], tp["b1"], tp["gamma1"], tp["beta1"])
    h = conv_bn_lrelu(h, tp["w2"], tp["b2"], tp["gamma2"], tp["beta2"])
    return h


if __name__ == "__main__":
    B, C_IN, C_OUT, H, W = 2, 4, 8, 16, 16   # dropout_p = 0.0 (identity)

    key = jax.random.PRNGKey(0)
    kx, kp = jax.random.split(key)
    x = jax.random.normal(kx, (B, C_IN, H, W), dtype=jnp.float32)

    torch_params = _init_torch_style_params(kp, C_IN, C_OUT)
    params = prepare_params(torch_params)    # layout prep happens once, outside jit

    out = jax.block_until_ready(down_block_forward(x, params))

    ref = _reference_downblock(x, torch_params)
    assert out.shape == (B, C_OUT, H // 2, W // 2)
    err = float(jnp.max(jnp.abs(out - ref)))
    assert jnp.allclose(out, ref, atol=1e-3, rtol=1e-3), f"mismatch vs reference (max abs err {err})"

    print("KERNEL_OK")
</pallas_src>

<mosaic_0001>
module attributes {stable_mosaic.version = 11 : i64} {
  func.func @_pool_conv_kernel(%arg0: i32, %arg1: memref<1x8x4x8x4xf32, #tpu.memory_space<vmem>>, %arg2: memref<3x3x4x8xf32, #tpu.memory_space<vmem>>, %arg3: memref<1x8xf32, #tpu.memory_space<vmem>>, %arg4: memref<1x64x8xf32, #tpu.memory_space<vmem>>, %arg5: memref<1x1x8xf32, #tpu.memory_space<vmem>>, %arg6: memref<1x1x8xf32, #tpu.memory_space<vmem>>, %arg7: memref<10x16x4xf32, #tpu.memory_space<vmem>>) attributes {dimension_semantics = [#tpu.dimension_semantics<parallel>], iteration_bounds = array<i64: 2>, scalar_prefetch = 0 : i64, scratch_operands = 1 : i64, tpu.core_type = #tpu.core_type<tc>, window_params = [{transform_indices = @transform_0, window_bounds = array<i64: 1, 8, 4, 8, 4>}, {pipeline_mode = #tpu.pipeline_mode<synchronous>, transform_indices = @transform_1, window_bounds = array<i64: 3, 3, 4, 8>}, {pipeline_mode = #tpu.pipeline_mode<synchronous>, transform_indices = @transform_2, window_bounds = array<i64: 1, 8>}, {transform_indices = @transform_3, window_bounds = array<i64: 1, 64, 8>}, {transform_indices = @transform_4, window_bounds = array<i64: 1, 1, 8>}, {transform_indices = @transform_5, window_bounds = array<i64: 1, 1, 8>}]} {
    %c0 = arith.constant 0 : index
    %c0_0 = arith.constant 0 : index
    %c0_1 = arith.constant 0 : index
    %c0_2 = arith.constant 0 : index
    %c0_3 = arith.constant 0 : index
    %0 = vector.load %arg1[%c0, %c0_0, %c0_1, %c0_2, %c0_3] : memref<1x8x4x8x4xf32, #tpu.memory_space<vmem>>, vector<1x8x4x8x4xf32>
    %1 = vector.shape_cast %0 : vector<1x8x4x8x4xf32> to vector<8x4x8x4xf32>
    %2 = vector.extract_strided_slice %1 {offsets = [0, 0, 0, 0], sizes = [8, 1, 8, 4], strides = [1, 1, 1, 1]} : vector<8x4x8x4xf32> to vector<8x1x8x4xf32>
    %3 = vector.shape_cast %2 : vector<8x1x8x4xf32> to vector<8x8x4xf32>
    %4 = vector.extract_strided_slice %1 {offsets = [0, 1, 0, 0], sizes = [8, 1, 8, 4], strides = [1, 1, 1, 1]} : vector<8x4x8x4xf32> to vector<8x1x8x4xf32>
    %5 = vector.shape_cast %4 : vector<8x1x8x4xf32> to vector<8x8x4xf32>
    %6 = arith.maximumf %3, %5 : vector<8x8x4xf32>
    %7 = vector.extract_strided_slice %1 {offsets = [0, 2, 0, 0], sizes = [8, 1, 8, 4], strides = [1, 1, 1, 1]} : vector<8x4x8x4xf32> to vector<8x1x8x4xf32>
    %8 = vector.shape_cast %7 : vector<8x1x8x4xf32> to vector<8x8x4xf32>
    %9 = vector.extract_strided_slice %1 {offsets = [0, 3, 0, 0], sizes = [8, 1, 8, 4], strides = [1, 1, 1, 1]} : vector<8x4x8x4xf32> to vector<8x1x8x4xf32>
    %10 = vector.shape_cast %9 : vector<8x1x8x4xf32> to vector<8x8x4xf32>
    %11 = arith.maximumf %8, %10 : vector<8x8x4xf32>
    %12 = arith.maximumf %6, %11 : vector<8x8x4xf32>
    %cst = arith.constant 0.000000e+00 : f32
    %13 = vector.broadcast %cst : f32 to vector<10x16x4xf32>
    %c0_4 = arith.constant 0 : index
    %c0_5 = arith.constant 0 : index
    %c0_6 = arith.constant 0 : index
    %14 = vector.load %arg7[%c0_4, %c0_5, %c0_6] : memref<10x16x4xf32, #tpu.memory_space<vmem>>, vector<10x16x4xf32>
    tpu.vector_store %arg7[%c0_4, %c0_5, %c0_6], %13 {strides = array<i32>} : memref<10x16x4xf32, #tpu.memory_space<vmem>>, vector<10x16x4xf32>,
    %c1 = arith.constant 1 : index
    %c0_7 = arith.constant 0 : index
    %c0_8 = arith.constant 0 : index
    %15 = vector.load %arg7[%c1, %c0_7, %c0_8] : memref<10x16x4xf32, #tpu.memory_space<vmem>>, vector<8x8x4xf32>
    tpu.vector_store %arg7[%c1, %c0_7, %c0_8], %12 {strides = array<i32>} : memref<10x16x4xf32, #tpu.memory_space<vmem>>, vector<8x8x4xf32>,
    %c0_9 = arith.constant 0 : index
    %c0_10 = arith.constant 0 : index
    %c0_11 = arith.constant 0 : index
    %16 = vector.load %arg7[%c0_9, %c0_10, %c0_11] : memref<10x16x4xf32, #tpu.memory_space<vmem>>, vector<10x16x4xf32>
    %cst_12 = arith.constant 0.000000e+00 : f32
    %17 = vector.broadcast %cst_12 : f32 to vector<64x8xf32>
    %c1_i32 = arith.constant 1 : i32
    %18 = tpu.dynamic_rotate %16 by %c1_i32 dim 1 : vector<10x16x4xf32>, i32 -> vector<10x16x4xf32>
    %19 = vector.extract_strided_slice %18 {offsets = [0, 0, 0], sizes = [8, 8, 4], strides = [1, 1, 1]} : vector<10x16x4xf32> to vector<8x8x4xf32>
    %20 = vector.shape_cast %19 : vector<8x8x4xf32> to vector<64x4xf32>
    %c0_13 = arith.constant 0 : index
    %c0_14 = arith.constant 0 : index
    %c0_15 = arith.constant 0 : index
    %c0_16 = arith.constant 0 : index
    %21 = vector.load %arg2[%c0_13, %c0_14, %c0_15, %c0_16] : memref<3x3x4x8xf32, #tpu.memory_space<vmem>>, vector<1x1x4x8xf32>
    %22 = vector.shape_cast %21 : vector<1x1x4x8xf32> to vector<4x8xf32>
    %cst_17 = arith.constant dense<0.000000e+00> : vector<64x8xf32>
    %23 = tpu.matmul %20, %22, %cst_17 {dimension_numbers = #tpu.dot_dimension_numbers<[1], [0], [0], [1], [0, 0, 1, 1], [], []>} : vector<64x4xf32>, vector<4x8xf32>, vector<64x8xf32> -> vector<64x8xf32>
    %24 = arith.addf %17, %23 : vector<64x8xf32>
    %25 = vector.extract_strided_slice %18 {offsets = [1, 0, 0], sizes = [8, 8, 4], strides = [1, 1, 1]} : vector<10x16x4xf32> to vector<8x8x4xf32>
    %26 = vector.shape_cast %25 : vector<8x8x4xf32> to vector<64x4xf32>
    %c1_18 = arith.constant 1 : index
    %c0_19 = arith.constant 0 : index
    %c0_20 = arith.constant 0 : index
    %c0_21 = arith.constant 0 : index
    %27 = vector.load %arg2[%c1_18, %c0_19, %c0_20, %c0_21] : memref<3x3x4x8xf32, #tpu.memory_space<vmem>>, vector<1x1x4x8xf32>
    %28 = vector.shape_cast %27 : vector<1x1x4x8xf32> to vector<4x8xf32>
    %cst_22 = arith.constant dense<0.000000e+00> : vector<64x8xf32>
    %29 = tpu.matmul %26, %28, %cst_22 {dimension_numbers = #tpu.dot_dimension_numbers<[1], [0], [0], [1], [0, 0, 1, 1], [], []>} : vector<64x4xf32>, vector<4x8xf32>, vector<64x8xf32> -> vector<64x8xf32>
    %30 = arith.addf %24, %29 : vector<64x8xf32>
    %31 = vector.extract_strided_slice %18 {offsets = [2, 0, 0], sizes = [8, 8, 4], strides = [1, 1, 1]} : vector<10x16x4xf32> to vector<8x8x4xf32>
    %32 = vector.shape_cast %31 : vector<8x8x4xf32> to vector<64x4xf32>
    %c2 = arith.constant 2 : index
    %c0_23 = arith.constant 0 : index
    %c0_24 = arith.constant 0 : index
    %c0_25 = arith.constant 0 : index
    %33 = vector.load %arg2[%c2, %c0_23, %c0_24, %c0_25] : memref<3x3x4x8xf32, #tpu.memory_space<vmem>>, vector<1x1x4x8xf32>
    %34 = vector.shape_cast %33 : vector<1x1x4x8xf32> to vector<4x8xf32>
    %cst_26 = arith.constant dense<0.000000e+00> : vector<64x8xf32>
    %35 = tpu.matmul %32, %34, %cst_26 {dimension_numbers = #tpu.dot_dimension_numbers<[1], [0], [0], [1], [0, 0, 1, 1], [], []>} : vector<64x4xf32>, vector<4x8xf32>, vector<64x8xf32> -> vector<64x8xf32>
    %36 = arith.addf %30, %35 : vector<64x8xf32>
    %37 = vector.extract_strided_slice %16 {offsets = [0, 0, 0], sizes = [8, 8, 4], strides = [1, 1, 1]} : vector<10x16x4xf32> to vector<8x8x4xf32>
    %38 = vector.shape_cast %37 : vector<8x8x4xf32> to vector<64x4xf32>
    %c0_27 = arith.constant 0 : index
    %c1_28 = arith.constant 1 : index
    %c0_29 = arith.constant 0 : index
    %c0_30 = arith.constant 0 : index
    %39 = vector.load %arg2[%c0_27, %c1_28, %c0_29, %c0_30] : memref<3x3x4x8xf32, #tpu.memory_space<vmem>>, vector<1x1x4x8xf32>
    %40 = vector.shape_cast %39 : vector<1x1x4x8xf32> to vector<4x8xf32>
    %cst_31 = arith.constant dense<0.000000e+00> : vector<64x8xf32>
    %41 = tpu.matmul %38, %40, %cst_31 {dimension_numbers = #tpu.dot_dimension_numbers<[1], [0], [0], [1], [0, 0, 1, 1], [], []>} : vector<64x4xf32>, vector<4x8xf32>, vector<64x8xf32> -> vector<64x8xf32>
    %42 = arith.addf %36, %41 : vector<64x8xf32>
    %43 = vector.extract_strided_slice %16 {offsets = [1, 0, 0], sizes = [8, 8, 4], strides = [1, 1, 1]} : vector<10x16x4xf32> to vector<8x8x4xf32>
    %44 = vector.shape_cast %43 : vector<8x8x4xf32> to vector<64x4xf32>
    %c1_32 = arith.constant 1 : index
    %c1_33 = arith.constant 1 : index
    %c0_34 = arith.constant 0 : index
    %c0_35 = arith.constant 0 : index
    %45 = vector.load %arg2[%c1_32, %c1_33, %c0_34, %c0_35] : memref<3x3x4x8xf32, #tpu.memory_space<vmem>>, vector<1x1x4x8xf32>
    %46 = vector.shape_cast %45 : vector<1x1x4x8xf32> to vector<4x8xf32>
    %cst_36 = arith.constant dense<0.000000e+00> : vector<64x8xf32>
    %47 = tpu.matmul %44, %46, %cst_36 {dimension_numbers = #tpu.dot_dimension_numbers<[1], [0], [0], [1], [0, 0, 1, 1], [], []>} : vector<64x4xf32>, vector<4x8xf32>, vector<64x8xf32> -> vector<64x8xf32>
    %48 = arith.addf %42, %47 : vector<64x8xf32>
    %49 = vector.extract_strided_slice %16 {offsets = [2, 0, 0], sizes = [8, 8, 4], strides = [1, 1, 1]} : vector<10x16x4xf32> to vector<8x8x4xf32>
    %50 = vector.shape_cast %49 : vector<8x8x4xf32> to vector<64x4xf32>
    %c2_37 = arith.constant 2 : index
    %c1_38 = arith.constant 1 : index
    %c0_39 = arith.constant 0 : index
    %c0_40 = arith.constant 0 : index
    %51 = vector.load %arg2[%c2_37, %c1_38, %c0_39, %c0_40] : memref<3x3x4x8xf32, #tpu.memory_space<vmem>>, vector<1x1x4x8xf32>
    %52 = vector.shape_cast %51 : vector<1x1x4x8xf32> to vector<4x8xf32>
    %cst_41 = arith.constant dense<0.000000e+00> : vector<64x8xf32>
    %53 = tpu.matmul %50, %52, %cst_41 {dimension_numbers = #tpu.dot_dimension_numbers<[1], [0], [0], [1], [0, 0, 1, 1], [], []>} : vector<64x4xf32>, vector<4x8xf32>, vector<64x8xf32> -> vector<64x8xf32>
    %54 = arith.addf %48, %53 : vector<64x8xf32>
    %c15_i32 = arith.constant 15 : i32
    %55 = tpu.dynamic_rotate %16 by %c15_i32 dim 1 : vector<10x16x4xf32>, i32 -> vector<10x16x4xf32>
    %56 = vector.extract_strided_slice %55 {offsets = [0, 0, 0], sizes = [8, 8, 4], strides = [1, 1, 1]} : vector<10x16x4xf32> to vector<8x8x4xf32>
    %57 = vector.shape_cast %56 : vector<8x8x4xf32> to vector<64x4xf32>
    %c0_42 = arith.constant 0 : index
    %c2_43 = arith.constant 2 : index
    %c0_44 = arith.constant 0 : index
    %c0_45 = arith.constant 0 : index
    %58 = vector.load %arg2[%c0_42, %c2_43, %c0_44, %c0_45] : memref<3x3x4x8xf32, #tpu.memory_space<vmem>>, vector<1x1x4x8xf32>
    %59 = vector.shape_cast %58 : vector<1x1x4x8xf32> to vector<4x8xf32>
    %cst_46 = arith.constant dense<0.000000e+00> : vector<64x8xf32>
    %60 = tpu.matmul %57, %59, %cst_46 {dimension_numbers = #tpu.dot_dimension_numbers<[1], [0], [0], [1], [0, 0, 1, 1], [], []>} : vector<64x4xf32>, vector<4x8xf32>, vector<64x8xf32> -> vector<64x8xf32>
    %61 = arith.addf %54, %60 : vector<64x8xf32>
    %62 = vector.extract_strided_slice %55 {offsets = [1, 0, 0], sizes = [8, 8, 4], strides = [1, 1, 1]} : vector<10x16x4xf32> to vector<8x8x4xf32>
    %63 = vector.shape_cast %62 : vector<8x8x4xf32> to vector<64x4xf32>
    %c1_47 = arith.constant 1 : index
    %c2_48 = arith.constant 2 : index
    %c0_49 = arith.constant 0 : index
    %c0_50 = arith.constant 0 : index
    %64 = vector.load %arg2[%c1_47, %c2_48, %c0_49, %c0_50] : memref<3x3x4x8xf32, #tpu.memory_space<vmem>>, vector<1x1x4x8xf32>
    %65 = vector.shape_cast %64 : vector<1x1x4x8xf32> to vector<4x8xf32>
    %cst_51 = arith.constant dense<0.000000e+00> : vector<64x8xf32>
    %66 = tpu.matmul %63, %65, %cst_51 {dimension_numbers = #tpu.dot_dimension_numbers<[1], [0], [0], [1], [0, 0, 1, 1], [], []>} : vector<64x4xf32>, vector<4x8xf32>, vector<64x8xf32> -> vector<64x8xf32>
    %67 = arith.addf %61, %66 : vector<64x8xf32>
    %68 = vector.extract_strided_slice %55 {offsets = [2, 0, 0], sizes = [8, 8, 4], strides = [1, 1, 1]} : vector<10x16x4xf32> to vector<8x8x4xf32>
    %69 = vector.shape_cast %68 : vector<8x8x4xf32> to vector<64x4xf32>
    %c2_52 = arith.constant 2 : index
    %c2_53 = arith.constant 2 : index
    %c0_54 = arith.constant 0 : index
    %c0_55 = arith.constant 0 : index
    %70 = vector.load %arg2[%c2_52, %c2_53, %c0_54, %c0_55] : memref<3x3x4x8xf32, #tpu.memory_space<vmem>>, vector<1x1x4x8xf32>
    %71 = vector.shape_cast %70 : vector<1x1x4x8xf32> to vector<4x8xf32>
    %cst_56 = arith.constant dense<0.000000e+00> : vector<64x8xf32>
    %72 = tpu.matmul %69, %71, %cst_56 {dimension_numbers = #tpu.dot_dimension_numbers<[1], [0], [0], [1], [0, 0, 1, 1], [], []>} : vector<64x4xf32>, vector<4x8xf32>, vector<64x8xf32> -> vector<64x8xf32>
    %73 = arith.addf %67, %72 : vector<64x8xf32>
    %c0_57 = arith.constant 0 : index
    %c0_58 = arith.constant 0 : index
    %74 = vector.load %arg3[%c0_57, %c0_58] : memref<1x8xf32, #tpu.memory_space<vmem>>, vector<1x8xf32>
    %75 = vector.broadcast %74 : vector<1x8xf32> to vector<64x8xf32>
    %76 = arith.addf %73, %75 : vector<64x8xf32>
    %c0_59 = arith.constant 0 : index
    %c0_60 = arith.constant 0 : index
    %c0_61 = arith.constant 0 : index
    %77 = vector.load %arg4[%c0_59, %c0_60, %c0_61] : memref<1x64x8xf32, #tpu.memory_space<vmem>>, vector<1x64x8xf32>
    %78 = vector.shape_cast %77 : vector<1x64x8xf32> to vector<64x8xf32>
    %79 = vector.shape_cast %76 : vector<64x8xf32> to vector<1x64x8xf32>
    tpu.vector_store %arg4[%c0_59, %c0_60, %c0_61], %79 {strides = array<i32>} : memref<1x64x8xf32, #tpu.memory_space<vmem>>, vector<1x64x8xf32>,
    %cst_62 = arith.constant dense<0.000000e+00> : vector<8xf32>
    %80 = vector.multi_reduction <add>, %76, %cst_62 [0] : vector<64x8xf32> to vector<8xf32>
    %81 = vector.shape_cast %80 : vector<8xf32> to vector<1x1x8xf32>
    %c0_63 = arith.constant 0 : index
    %c0_64 = arith.constant 0 : index
    %c0_65 = arith.constant 0 : index
    %82 = vector.load %arg5[%c0_63, %c0_64, %c0_65] : memref<1x1x8xf32, #tpu.memory_space<vmem>>, vector<1x1x8xf32>
    tpu.vector_store %arg5[%c0_63, %c0_64, %c0_65], %81 {strides = array<i32>} : memref<1x1x8xf32, #tpu.memory_space<vmem>>, vector<1x1x8xf32>,
    %83 = arith.mulf %76, %76 : vector<64x8xf32>
    %cst_66 = arith.constant dense<0.000000e+00> : vector<8xf32>
    %84 = vector.multi_reduction <add>, %83, %cst_66 [0] : vector<64x8xf32> to vector<8xf32>
    %85 = vector.shape_cast %84 : vector<8xf32> to vector<1x1x8xf32>
    %c0_67 = arith.constant 0 : index
    %c0_68 = arith.constant 0 : index
    %c0_69 = arith.constant 0 : index
    %86 = vector.load %arg6[%c0_67, %c0_68, %c0_69] : memref<1x1x8xf32, #tpu.memory_space<vmem>>, vector<1x1x8xf32>
    tpu.vector_store %arg6[%c0_67, %c0_68, %c0_69], %85 {strides = array<i32>} : memref<1x1x8xf32, #tpu.memory_space<vmem>>, vector<1x1x8xf32>,
    return
  }
  func.func @transform_0(%arg0: i32) -> (i32, i32, i32, i32, i32) {
    %c0_i32 = arith.constant 0 : i32
    %c0_i32_0 = arith.constant 0 : i32
    %c0_i32_1 = arith.constant 0 : i32
    %c0_i32_2 = arith.constant 0 : i32
    %c0_i32_3 = arith.constant 0 : i32
    return %arg0, %c0_i32, %c0_i32_0, %c0_i32_1, %c0_i32_2 : i32, i32, i32, i32, i32
  }
  func.func @transform_1(%arg0: i32) -> (i32, i32, i32, i32) {
    %c0_i32 = arith.constant 0 : i32
    %c0_i32_0 = arith.constant 0 : i32
    %c0_i32_1 = arith.constant 0 : i32
    %c0_i32_2 = arith.constant 0 : i32
    %c0_i32_3 = arith.constant 0 : i32
    return %c0_i32, %c0_i32_0, %c0_i32_1, %c0_i32_2 : i32, i32, i32, i32
  }
  func.func @transform_2(%arg0: i32) -> (i32, i32) {
    %c0_i32 = arith.constant 0 : i32
    %c0_i32_0 = arith.constant 0 : i32
    %c0_i32_1 = arith.constant 0 : i32
    return %c0_i32, %c0_i32_0 : i32, i32
  }
  func.func @transform_3(%arg0: i32) -> (i32, i32, i32) {
    %c0_i32 = arith.constant 0 : i32
    %c0_i32_0 = arith.constant 0 : i32
    %c0_i32_1 = arith.constant 0 : i32
    return %arg0, %c0_i32, %c0_i32_0 : i32, i32, i32
  }
  func.func @transform_4(%arg0: i32) -> (i32, i32, i32) {
    %c0_i32 = arith.constant 0 : i32
    %c0_i32_0 = arith.constant 0 : i32
    %c0_i32_1 = arith.constant 0 : i32
    return %arg0, %c0_i32, %c0_i32_0 : i32, i32, i32
  }
  func.func @transform_5(%arg0: i32) -> (i32, i32, i32) {
    %c0_i32 = arith.constant 0 : i32
    %c0_i32_0 = arith.constant 0 : i32
    %c0_i32_1 = arith.constant 0 : i32
    return %arg0, %c0_i32, %c0_i32_0 : i32, i32, i32
  }
}

module attributes {stable_mosaic.version = 11 : i64} {
  func.func @_bn_act_kernel(%arg0: i32, %arg1: memref<1x64x8xf32, #tpu.memory_space<vmem>>, %arg2: memref<1x8xf32, #tpu.memory_space<vmem>>, %arg3: memref<1x8xf32, #tpu.memory_space<vmem>>, %arg4: memref<1x64x8xf32, #tpu.memory_space<vmem>>) attributes {dimension_semantics = [#tpu.dimension_semantics<parallel>], iteration_bounds = array<i64: 2>, scalar_prefetch = 0 : i64, scratch_operands = 0 : i64, tpu.core_type = #tpu.core_type<tc>, window_params = [{transform_indices = @transform_0, window_bounds = array<i64: 1, 64, 8>}, {pipeline_mode = #tpu.pipeline_mode<synchronous>, transform_indices = @transform_1, window_bounds = array<i64: 1, 8>}, {pipeline_mode = #tpu.pipeline_mode<synchronous>, transform_indices = @transform_2, window_bounds = array<i64: 1, 8>}, {transform_indices = @transform_3, window_bounds = array<i64: 1, 64, 8>}]} {
    %c0 = arith.constant 0 : index
    %c0_0 = arith.constant 0 : index
    %c0_1 = arith.constant 0 : index
    %0 = vector.load %arg1[%c0, %c0_0, %c0_1] : memref<1x64x8xf32, #tpu.memory_space<vmem>>, vector<1x64x8xf32>
    %1 = vector.shape_cast %0 : vector<1x64x8xf32> to vector<64x8xf32>
    %c0_2 = arith.constant 0 : index
    %c0_3 = arith.constant 0 : index
    %2 = vector.load %arg2[%c0_2, %c0_3] : memref<1x8xf32, #tpu.memory_space<vmem>>, vector<1x8xf32>
    %3 = vector.broadcast %2 : vector<1x8xf32> to vector<64x8xf32>
    %4 = arith.mulf %1, %3 : vector<64x8xf32>
    %c0_4 = arith.constant 0 : index
    %c0_5 = arith.constant 0 : index
    %5 = vector.load %arg3[%c0_4, %c0_5] : memref<1x8xf32, #tpu.memory_space<vmem>>, vector<1x8xf32>
    %6 = vector.broadcast %5 : vector<1x8xf32> to vector<64x8xf32>
    %7 = arith.addf %4, %6 : vector<64x8xf32>
    %cst = arith.constant 0.000000e+00 : f32
    %8 = vector.broadcast %cst : f32 to vector<64x8xf32>
    %9 = arith.cmpf oge, %7, %8 : vector<64x8xf32>
    %cst_6 = arith.constant 0.00999999977 : f32
    %10 = vector.broadcast %cst_6 : f32 to vector<64x8xf32>
    %11 = arith.mulf %10, %7 : vector<64x8xf32>
    %12 = arith.select %9, %7, %11 : vector<64x8xi1>, vector<64x8xf32>
    %c0_7 = arith.constant 0 : index
    %c0_8 = arith.constant 0 : index
    %c0_9 = arith.constant 0 : index
    %13 = vector.load %arg4[%c0_7, %c0_8, %c0_9] : memref<1x64x8xf32, #tpu.memory_space<vmem>>, vector<1x64x8xf32>
    %14 = vector.shape_cast %13 : vector<1x64x8xf32> to vector<64x8xf32>
    %15 = vector.shape_cast %12 : vector<64x8xf32> to vector<1x64x8xf32>
    tpu.vector_store %arg4[%c0_7, %c0_8, %c0_9], %15 {strides = array<i32>} : memref<1x64x8xf32, #tpu.memory_space<vmem>>, vector<1x64x8xf32>,
    return
  }
  func.func @transform_0(%arg0: i32) -> (i32, i32, i32) {
    %c0_i32 = arith.constant 0 : i32
    %c0_i32_0 = arith.constant 0 : i32
    %c0_i32_1 = arith.constant 0 : i32
    return %arg0, %c0_i32, %c0_i32_0 : i32, i32, i32
  }
  func.func @transform_1(%arg0: i32) -> (i32, i32) {
    %c0_i32 = arith.constant 0 : i32
    %c0_i32_0 = arith.constant 0 : i32
    %c0_i32_1 = arith.constant 0 : i32
    return %c0_i32, %c0_i32_0 : i32, i32
  }
  func.func @transform_2(%arg0: i32) -> (i32, i32) {
    %c0_i32 = arith.constant 0 : i32
    %c0_i32_0 = arith.constant 0 : i32
    %c0_i32_1 = arith.constant 0 : i32
    return %c0_i32, %c0_i32_0 : i32, i32
  }
  func.func @transform_3(%arg0: i32) -> (i32, i32, i32) {
    %c0_i32 = arith.constant 0 : i32
    %c0_i32_0 = arith.constant 0 : i32
    %c0_i32_1 = arith.constant 0 : i32
    return %arg0, %c0_i32, %c0_i32_0 : i32, i32, i32
  }
}

module attributes {stable_mosaic.version = 11 : i64} {
  func.func @_bn_act_conv_kernel(%arg0: i32, %arg1: memref<1x64x8xf32, #tpu.memory_space<vmem>>, %arg2: memref<1x8xf32, #tpu.memory_space<vmem>>, %arg3: memref<1x8xf32, #tpu.memory_space<vmem>>, %arg4: memref<3x3x8x8xf32, #tpu.memory_space<vmem>>, %arg5: memref<1x8xf32, #tpu.memory_space<vmem>>, %arg6: memref<1x64x8xf32, #tpu.memory_space<vmem>>, %arg7: memref<1x1x8xf32, #tpu.memory_space<vmem>>, %arg8: memref<1x1x8xf32, #tpu.memory_space<vmem>>, %arg9: memref<10x16x8xf32, #tpu.memory_space<vmem>>) attributes {dimension_semantics = [#tpu.dimension_semantics<parallel>], iteration_bounds = array<i64: 2>, scalar_prefetch = 0 : i64, scratch_operands = 1 : i64, tpu.core_type = #tpu.core_type<tc>, window_params = [{transform_indices = @transform_0, window_bounds = array<i64: 1, 64, 8>}, {pipeline_mode = #tpu.pipeline_mode<synchronous>, transform_indices = @transform_1, window_bounds = array<i64: 1, 8>}, {pipeline_mode = #tpu.pipeline_mode<synchronous>, transform_indices = @transform_2, window_bounds = array<i64: 1, 8>}, {pipeline_mode = #tpu.pipeline_mode<synchronous>, transform_indices = @transform_3, window_bounds = array<i64: 3, 3, 8, 8>}, {pipeline_mode = #tpu.pipeline_mode<synchronous>, transform_indices = @transform_4, window_bounds = array<i64: 1, 8>}, {transform_indices = @transform_5, window_bounds = array<i64: 1, 64, 8>}, {transform_indices = @transform_6, window_bounds = array<i64: 1, 1, 8>}, {transform_indices = @transform_7, window_bounds = array<i64: 1, 1, 8>}]} {
    %c0 = arith.constant 0 : index
    %c0_0 = arith.constant 0 : index
    %c0_1 = arith.constant 0 : index
    %0 = vector.load %arg1[%c0, %c0_0, %c0_1] : memref<1x64x8xf32, #tpu.memory_space<vmem>>, vector<1x64x8xf32>
    %1 = vector.shape_cast %0 : vector<1x64x8xf32> to vector<64x8xf32>
    %c0_2 = arith.constant 0 : index
    %c0_3 = arith.constant 0 : index
    %2 = vector.load %arg2[%c0_2, %c0_3] : memref<1x8xf32, #tpu.memory_space<vmem>>, vector<1x8xf32>
    %3 = vector.broadcast %2 : vector<1x8xf32> to vector<64x8xf32>
    %4 = arith.mulf %1, %3 : vector<64x8xf32>
    %c0_4 = arith.constant 0 : index
    %c0_5 = arith.constant 0 : index
    %5 = vector.load %arg3[%c0_4, %c0_5] : memref<1x8xf32, #tpu.memory_space<vmem>>, vector<1x8xf32>
    %6 = vector.broadcast %5 : vector<1x8xf32> to vector<64x8xf32>
    %7 = arith.addf %4, %6 : vector<64x8xf32>
    %cst = arith.constant 0.000000e+00 : f32
    %8 = vector.broadcast %cst : f32 to vector<64x8xf32>
    %9 = arith.cmpf oge, %7, %8 : vector<64x8xf32>
    %cst_6 = arith.constant 0.00999999977 : f32
    %10 = vector.broadcast %cst_6 : f32 to vector<64x8xf32>
    %11 = arith.mulf %10, %7 : vector<64x8xf32>
    %12 = arith.select %9, %7, %11 : vector<64x8xi1>, vector<64x8xf32>
    %13 = vector.shape_cast %12 : vector<64x8xf32> to vector<8x8x8xf32>
    %cst_7 = arith.constant 0.000000e+00 : f32
    %14 = vector.broadcast %cst_7 : f32 to vector<10x16x8xf32>
    %c0_8 = arith.constant 0 : index
    %c0_9 = arith.constant 0 : index
    %c0_10 = arith.constant 0 : index
    %15 = vector.load %arg9[%c0_8, %c0_9, %c0_10] : memref<10x16x8xf32, #tpu.memory_space<vmem>>, vector<10x16x8xf32>
    tpu.vector_store %arg9[%c0_8, %c0_9, %c0_10], %14 {strides = array<i32>} : memref<10x16x8xf32, #tpu.memory_space<vmem>>, vector<10x16x8xf32>,
    %c1 = arith.constant 1 : index
    %c0_11 = arith.constant 0 : index
    %c0_12 = arith.constant 0 : index
    %16 = vector.load %arg9[%c1, %c0_11, %c0_12] : memref<10x16x8xf32, #tpu.memory_space<vmem>>, vector<8x8x8xf32>
    tpu.vector_store %arg9[%c1, %c0_11, %c0_12], %13 {strides = array<i32>} : memref<10x16x8xf32, #tpu.memory_space<vmem>>, vector<8x8x8xf32>,
    %c0_13 = arith.constant 0 : index
    %c0_14 = arith.constant 0 : index
    %c0_15 = arith.constant 0 : index
    %17 = vector.load %arg9[%c0_13, %c0_14, %c0_15] : memref<10x16x8xf32, #tpu.memory_space<vmem>>, vector<10x16x8xf32>
    %cst_16 = arith.constant 0.000000e+00 : f32
    %18 = vector.broadcast %cst_16 : f32 to vector<64x8xf32>
    %c1_i32 = arith.constant 1 : i32
    %19 = tpu.dynamic_rotate %17 by %c1_i32 dim 1 : vector<10x16x8xf32>, i32 -> vector<10x16x8xf32>
    %20 = vector.extract_strided_slice %19 {offsets = [0, 0, 0], sizes = [8, 8, 8], strides = [1, 1, 1]} : vector<10x16x8xf32> to vector<8x8x8xf32>
    %21 = vector.shape_cast %20 : vector<8x8x8xf32> to vector<64x8xf32>
    %c0_17 = arith.constant 0 : index
    %c0_18 = arith.constant 0 : index
    %c0_19 = arith.constant 0 : index
    %c0_20 = arith.constant 0 : index
    %22 = vector.load %arg4[%c0_17, %c0_18, %c0_19, %c0_20] : memref<3x3x8x8xf32, #tpu.memory_space<vmem>>, vector<1x1x8x8xf32>
    %23 = vector.shape_cast %22 : vector<1x1x8x8xf32> to vector<8x8xf32>
    %cst_21 = arith.constant dense<0.000000e+00> : vector<64x8xf32>
    %24 = tpu.matmul %21, %23, %cst_21 {dimension_numbers = #tpu.dot_dimension_numbers<[1], [0], [0], [1], [0, 0, 1, 1], [], []>} : vector<64x8xf32>, vector<8x8xf32>, vector<64x8xf32> -> vector<64x8xf32>
    %25 = arith.addf %18, %24 : vector<64x8xf32>
    %26 = vector.extract_strided_slice %19 {offsets = [1, 0, 0], sizes = [8, 8, 8], strides = [1, 1, 1]} : vector<10x16x8xf32> to vector<8x8x8xf32>
    %27 = vector.shape_cast %26 : vector<8x8x8xf32> to vector<64x8xf32>
    %c1_22 = arith.constant 1 : index
    %c0_23 = arith.constant 0 : index
    %c0_24 = arith.constant 0 : index
    %c0_25 = arith.constant 0 : index
    %28 = vector.load %arg4[%c1_22, %c0_23, %c0_24, %c0_25] : memref<3x3x8x8xf32, #tpu.memory_space<vmem>>, vector<1x1x8x8xf32>
    %29 = vector.shape_cast %28 : vector<1x1x8x8xf32> to vector<8x8xf32>
    %cst_26 = arith.constant dense<0.000000e+00> : vector<64x8xf32>
    %30 = tpu.matmul %27, %29, %cst_26 {dimension_numbers = #tpu.dot_dimension_numbers<[1], [0], [0], [1], [0, 0, 1, 1], [], []>} : vector<64x8xf32>, vector<8x8xf32>, vector<64x8xf32> -> vector<64x8xf32>
    %31 = arith.addf %25, %30 : vector<64x8xf32>
    %32 = vector.extract_strided_slice %19 {offsets = [2, 0, 0], sizes = [8, 8, 8], strides = [1, 1, 1]} : vector<10x16x8xf32> to vector<8x8x8xf32>
    %33 = vector.shape_cast %32 : vector<8x8x8xf32> to vector<64x8xf32>
    %c2 = arith.constant 2 : index
    %c0_27 = arith.constant 0 : index
    %c0_28 = arith.constant 0 : index
    %c0_29 = arith.constant 0 : index
    %34 = vector.load %arg4[%c2, %c0_27, %c0_28, %c0_29] : memref<3x3x8x8xf32, #tpu.memory_space<vmem>>, vector<1x1x8x8xf32>
    %35 = vector.shape_cast %34 : vector<1x1x8x8xf32> to vector<8x8xf32>
    %cst_30 = arith.constant dense<0.000000e+00> : vector<64x8xf32>
    %36 = tpu.matmul %33, %35, %cst_30 {dimension_numbers = #tpu.dot_dimension_numbers<[1], [0], [0], [1], [0, 0, 1, 1], [], []>} : vector<64x8xf32>, vector<8x8xf32>, vector<64x8xf32> -> vector<64x8xf32>
    %37 = arith.addf %31, %36 : vector<64x8xf32>
    %38 = vector.extract_strided_slice %17 {offsets = [0, 0, 0], sizes = [8, 8, 8], strides = [1, 1, 1]} : vector<10x16x8xf32> to vector<8x8x8xf32>
    %39 = vector.shape_cast %38 : vector<8x8x8xf32> to vector<64x8xf32>
    %c0_31 = arith.constant 0 : index
    %c1_32 = arith.constant 1 : index
    %c0_33 = arith.constant 0 : index
    %c0_34 = arith.constant 0 : index
    %40 = vector.load %arg4[%c0_31, %c1_32, %c0_33, %c0_34] : memref<3x3x8x8xf32, #tpu.memory_space<vmem>>, vector<1x1x8x8xf32>
    %41 = vector.shape_cast %40 : vector<1x1x8x8xf32> to vector<8x8xf32>
    %cst_35 = arith.constant dense<0.000000e+00> : vector<64x8xf32>
    %42 = tpu.matmul %39, %41, %cst_35 {dimension_numbers = #tpu.dot_dimension_numbers<[1], [0], [0], [1], [0, 0, 1, 1], [], []>} : vector<64x8xf32>, vector<8x8xf32>, vector<64x8xf32> -> vector<64x8xf32>
    %43 = arith.addf %37, %42 : vector<64x8xf32>
    %44 = vector.extract_strided_slice %17 {offsets = [1, 0, 0], sizes = [8, 8, 8], strides = [1, 1, 1]} : vector<10x16x8xf32> to vector<8x8x8xf32>
    %45 = vector.shape_cast %44 : vector<8x8x8xf32> to vector<64x8xf32>
    %c1_36 = arith.constant 1 : index
    %c1_37 = arith.constant 1 : index
    %c0_38 = arith.constant 0 : index
    %c0_39 = arith.constant 0 : index
    %46 = vector.load %arg4[%c1_36, %c1_37, %c0_38, %c0_39] : memref<3x3x8x8xf32, #tpu.memory_space<vmem>>, vector<1x1x8x8xf32>
    %47 = vector.shape_cast %46 : vector<1x1x8x8xf32> to vector<8x8xf32>
    %cst_40 = arith.constant dense<0.000000e+00> : vector<64x8xf32>
    %48 = tpu.matmul %45, %47, %cst_40 {dimension_numbers = #tpu.dot_dimension_numbers<[1], [0], [0], [1], [0, 0, 1, 1], [], []>} : vector<64x8xf32>, vector<8x8xf32>, vector<64x8xf32> -> vector<64x8xf32>
    %49 = arith.addf %43, %48 : vector<64x8xf32>
    %50 = vector.extract_strided_slice %17 {offsets = [2, 0, 0], sizes = [8, 8, 8], strides = [1, 1, 1]} : vector<10x16x8xf32> to vector<8x8x8xf32>
    %51 = vector.shape_cast %50 : vector<8x8x8xf32> to vector<64x8xf32>
    %c2_41 = arith.constant 2 : index
    %c1_42 = arith.constant 1 : index
    %c0_43 = arith.constant 0 : index
    %c0_44 = arith.constant 0 : index
    %52 = vector.load %arg4[%c2_41, %c1_42, %c0_43, %c0_44] : memref<3x3x8x8xf32, #tpu.memory_space<vmem>>, vector<1x1x8x8xf32>
    %53 = vector.shape_cast %52 : vector<1x1x8x8xf32> to vector<8x8xf32>
    %cst_45 = arith.constant dense<0.000000e+00> : vector<64x8xf32>
    %54 = tpu.matmul %51, %53, %cst_45 {dimension_numbers = #tpu.dot_dimension_numbers<[1], [0], [0], [1], [0, 0, 1, 1], [], []>} : vector<64x8xf32>, vector<8x8xf32>, vector<64x8xf32> -> vector<64x8xf32>
    %55 = arith.addf %49, %54 : vector<64x8xf32>
    %c15_i32 = arith.constant 15 : i32
    %56 = tpu.dynamic_rotate %17 by %c15_i32 dim 1 : vector<10x16x8xf32>, i32 -> vector<10x16x8xf32>
    %57 = vector.extract_strided_slice %56 {offsets = [0, 0, 0], sizes = [8, 8, 8], strides = [1, 1, 1]} : vector<10x16x8xf32> to vector<8x8x8xf32>
    %58 = vector.shape_cast %57 : vector<8x8x8xf32> to vector<64x8xf32>
    %c0_46 = arith.constant 0 : index
    %c2_47 = arith.constant 2 : index
    %c0_48 = arith.constant 0 : index
    %c0_49 = arith.constant 0 : index
    %59 = vector.load %arg4[%c0_46, %c2_47, %c0_48, %c0_49] : memref<3x3x8x8xf32, #tpu.memory_space<vmem>>, vector<1x1x8x8xf32>
    %60 = vector.shape_cast %59 : vector<1x1x8x8xf32> to vector<8x8xf32>
    %cst_50 = arith.constant dense<0.000000e+00> : vector<64x8xf32>
    %61 = tpu.matmul %58, %60, %cst_50 {dimension_numbers = #tpu.dot_dimension_numbers<[1], [0], [0], [1], [0, 0, 1, 1], [], []>} : vector<64x8xf32>, vector<8x8xf32>, vector<64x8xf32> -> vector<64x8xf32>
    %62 = arith.addf %55, %61 : vector<64x8xf32>
    %63 = vector.extract_strided_slice %56 {offsets = [1, 0, 0], sizes = [8, 8, 8], strides = [1, 1, 1]} : vector<10x16x8xf32> to vector<8x8x8xf32>
    %64 = vector.shape_cast %63 : vector<8x8x8xf32> to vector<64x8xf32>
    %c1_51 = arith.constant 1 : index
    %c2_52 = arith.constant 2 : index
    %c0_53 = arith.constant 0 : index
    %c0_54 = arith.constant 0 : index
    %65 = vector.load %arg4[%c1_51, %c2_52, %c0_53, %c0_54] : memref<3x3x8x8xf32, #tpu.memory_space<vmem>>, vector<1x1x8x8xf32>
    %66 = vector.shape_cast %65 : vector<1x1x8x8xf32> to vector<8x8xf32>
    %cst_55 = arith.constant dense<0.000000e+00> : vector<64x8xf32>
    %67 = tpu.matmul %64, %66, %cst_55 {dimension_numbers = #tpu.dot_dimension_numbers<[1], [0], [0], [1], [0, 0, 1, 1], [], []>} : vector<64x8xf32>, vector<8x8xf32>, vector<64x8xf32> -> vector<64x8xf32>
    %68 = arith.addf %62, %67 : vector<64x8xf32>
    %69 = vector.extract_strided_slice %56 {offsets = [2, 0, 0], sizes = [8, 8, 8], strides = [1, 1, 1]} : vector<10x16x8xf32> to vector<8x8x8xf32>
    %70 = vector.shape_cast %69 : vector<8x8x8xf32> to vector<64x8xf32>
    %c2_56 = arith.constant 2 : index
    %c2_57 = arith.constant 2 : index
    %c0_58 = arith.constant 0 : index
    %c0_59 = arith.constant 0 : index
    %71 = vector.load %arg4[%c2_56, %c2_57, %c0_58, %c0_59] : memref<3x3x8x8xf32, #tpu.memory_space<vmem>>, vector<1x1x8x8xf32>
    %72 = vector.shape_cast %71 : vector<1x1x8x8xf32> to vector<8x8xf32>
    %cst_60 = arith.constant dense<0.000000e+00> : vector<64x8xf32>
    %73 = tpu.matmul %70, %72, %cst_60 {dimension_numbers = #tpu.dot_dimension_numbers<[1], [0], [0], [1], [0, 0, 1, 1], [], []>} : vector<64x8xf32>, vector<8x8xf32>, vector<64x8xf32> -> vector<64x8xf32>
    %74 = arith.addf %68, %73 : vector<64x8xf32>
    %c0_61 = arith.constant 0 : index
    %c0_62 = arith.constant 0 : index
    %75 = vector.load %arg5[%c0_61, %c0_62] : memref<1x8xf32, #tpu.memory_space<vmem>>, vector<1x8xf32>
    %76 = vector.broadcast %75 : vector<1x8xf32> to vector<64x8xf32>
    %77 = arith.addf %74, %76 : vector<64x8xf32>
    %c0_63 = arith.constant 0 : index
    %c0_64 = arith.constant 0 : index
    %c0_65 = arith.constant 0 : index
    %78 = vector.load %arg6[%c0_63, %c0_64, %c0_65] : memref<1x64x8xf32, #tpu.memory_space<vmem>>, vector<1x64x8xf32>
    %79 = vector.shape_cast %78 : vector<1x64x8xf32> to vector<64x8xf32>
    %80 = vector.shape_cast %77 : vector<64x8xf32> to vector<1x64x8xf32>
    tpu.vector_store %arg6[%c0_63, %c0_64, %c0_65], %80 {strides = array<i32>} : memref<1x64x8xf32, #tpu.memory_space<vmem>>, vector<1x64x8xf32>,
    %cst_66 = arith.constant dense<0.000000e+00> : vector<8xf32>
    %81 = vector.multi_reduction <add>, %77, %cst_66 [0] : vector<64x8xf32> to vector<8xf32>
    %82 = vector.shape_cast %81 : vector<8xf32> to vector<1x1x8xf32>
    %c0_67 = arith.constant 0 : index
    %c0_68 = arith.constant 0 : index
    %c0_69 = arith.constant 0 : index
    %83 = vector.load %arg7[%c0_67, %c0_68, %c0_69] : memref<1x1x8xf32, #tpu.memory_space<vmem>>, vector<1x1x8xf32>
    tpu.vector_store %arg7[%c0_67, %c0_68, %c0_69], %82 {strides = array<i32>} : memref<1x1x8xf32, #tpu.memory_space<vmem>>, vector<1x1x8xf32>,
    %84 = arith.mulf %77, %77 : vector<64x8xf32>
    %cst_70 = arith.constant dense<0.000000e+00> : vector<8xf32>
    %85 = vector.multi_reduction <add>, %84, %cst_70 [0] : vector<64x8xf32> to vector<8xf32>
    %86 = vector.shape_cast %85 : vector<8xf32> to vector<1x1x8xf32>
    %c0_71 = arith.constant 0 : index
    %c0_72 = arith.constant 0 : index
    %c0_73 = arith.constant 0 : index
    %87 = vector.load %arg8[%c0_71, %c0_72, %c0_73] : memref<1x1x8xf32, #tpu.memory_space<vmem>>, vector<1x1x8xf32>
    tpu.vector_store %arg8[%c0_71, %c0_72, %c0_73], %86 {strides = array<i32>} : memref<1x1x8xf32, #tpu.memory_space<vmem>>, vector<1x1x8xf32>,
    return
  }
  func.func @transform_0(%arg0: i32) -> (i32, i32, i32) {
    %c0_i32 = arith.constant 0 : i32
    %c0_i32_0 = arith.constant 0 : i32
    %c0_i32_1 = arith.constant 0 : i32
    return %arg0, %c0_i32, %c0_i32_0 : i32, i32, i32
  }
  func.func @transform_1(%arg0: i32) -> (i32, i32) {
    %c0_i32 = arith.constant 0 : i32
    %c0_i32_0 = arith.constant 0 : i32
    %c0_i32_1 = arith.constant 0 : i32
    return %c0_i32, %c0_i32_0 : i32, i32
  }
  func.func @transform_2(%arg0: i32) -> (i32, i32) {
    %c0_i32 = arith.constant 0 : i32
    %c0_i32_0 = arith.constant 0 : i32
    %c0_i32_1 = arith.constant 0 : i32
    return %c0_i32, %c0_i32_0 : i32, i32
  }
  func.func @transform_3(%arg0: i32) -> (i32, i32, i32, i32) {
    %c0_i32 = arith.constant 0 : i32
    %c0_i32_0 = arith.constant 0 : i32
    %c0_i32_1 = arith.constant 0 : i32
    %c0_i32_2 = arith.constant 0 : i32
    %c0_i32_3 = arith.constant 0 : i32
    return %c0_i32, %c0_i32_0, %c0_i32_1, %c0_i32_2 : i32, i32, i32, i32
  }
  func.func @transform_4(%arg0: i32) -> (i32, i32) {
    %c0_i32 = arith.constant 0 : i32
    %c0_i32_0 = arith.constant 0 : i32
    %c0_i32_1 = arith.constant 0 : i32
    return %c0_i32, %c0_i32_0 : i32, i32
  }
  func.func @transform_5(%arg0: i32) -> (i32, i32, i32) {
    %c0_i32 = arith.constant 0 : i32
    %c0_i32_0 = arith.constant 0 : i32
    %c0_i32_1 = arith.constant 0 : i32
    return %arg0, %c0_i32, %c0_i32_0 : i32, i32, i32
  }
  func.func @transform_6(%arg0: i32) -> (i32, i32, i32) {
    %c0_i32 = arith.constant 0 : i32
    %c0_i32_0 = arith.constant 0 : i32
    %c0_i32_1 = arith.constant 0 : i32
    return %arg0, %c0_i32, %c0_i32_0 : i32, i32, i32
  }
  func.func @transform_7(%arg0: i32) -> (i32, i32, i32) {
    %c0_i32 = arith.constant 0 : i32
    %c0_i32_0 = arith.constant 0 : i32
    %c0_i32_1 = arith.constant 0 : i32
    return %arg0, %c0_i32, %c0_i32_0 : i32, i32, i32
  }
}

</mosaic_0001>

<bundles_post_ra>
// kernel: down_block_forward.5
= control target key start
LH: loop header
LB: loop body
LE: loop exit
PB: predicated region body
PF: predicated region fallthrough
CT: control target
= control target key end

     0   :  { %s342_s12 = smov 0   ;;  %s386_s0 = inlined_call_operand.vmem [shape: f32[2,64,8], index: 0, kind: input, shape index: {}]   ;;  %s387_s1 = inlined_call_operand.vmem [shape: f32[1,8], index: 1, kind: input, shape index: {}]   ;;  %s388_s2 = inlined_call_operand.vmem [shape: f32[1,8], index: 2, kind: input, shape index: {}]   ;;  %s389_s3 = inlined_call_operand.vmem [shape: f32[2,64,8], index: 3, kind: output, shape index: {}]  }
   0x1 LB: > { %s291_s13 = sadd.s32 4294967295, %s320_s12   ;;  %p295_p0 = scmp.ge.s32.totalorder %s320_s12, 1  ;;  %s320_s12 = sphi %s342_s12, %s13_s12  }
   0x2   : > { %p137_p1 = scmp.lt.s32.totalorder %s320_s12, 3 }
   0x4   : > { %p138_p2 = pnand %p295_p0, %p137_p1 }
   0x5   : > { %p161_p3 = scmp.lt.s32.totalorder (!%p138_p2), %s291_s13, 1 }
   0x6   : > { %141 = sbr.rel (%p138_p2) target bundleno = 30 (0x1e), region = 32 }
   0xb   : > { %s391_s13 = smov (!%p161_p3, %s291_s13), 1  ;;  %v312_v0 = vld [vmem:[%s387_s1] ss:$0 sm:$0xff]  ;;  %vm227_vm0 = vcmask 64512  }
   0xc   : > { %s302_s16 = sshll.u32 %s391_s13, 6  ;;  %v313_v1 = vld [vmem:[%s388_s2] ss:$0 sm:$0xff] }
   0xd   : > { %s165_s19 = scalar_lea.vmem %s386_s0, %s302_s16  ;;  %s365_s24 = scalar_lea.vmem %s389_s3, %s302_s16 }
   0xe   : > { %v171_v2 = vld [vmem:[%s165_s19] sm:$0xff]  ;;  %v172_v3 = vld [vmem:[%s165_s19 + $0x8] sm:$0xff]  ;;  %v173_v4 = vld [vmem:[%s165_s19 + $0x10] sm:$0xff] }
   0xf   : > { %v183_v5 = vmul.f32 %v312_v0, %v171_v2  ;;  %v184_v6 = vmul.f32 %v312_v0, %v172_v3  ;;  %v185_v7 = vmul.f32 %v312_v0, %v173_v4  ;;  %v174_v8 = vld [vmem:[%s165_s19 + $0x18] sm:$0xff]  ;;  %v175_v9 = vld [vmem:[%s165_s19 + $0x20] sm:$0xff]  ;;  %v176_v10 = vld [vmem:[%s165_s19 + $0x28] sm:$0xff] }
  0x10   : > { %v186_v11 = vmul.f32 %v312_v0, %v174_v8  ;;  %v187_v12 = vmul.f32 %v312_v0, %v175_v9  ;;  %v188_v13 = vmul.f32 %v312_v0, %v176_v10  ;;  %v177_v14 = vld [vmem:[%s165_s19 + $0x30] sm:$0xff]  ;;  %v178_v15 = vld [vmem:[%s165_s19 + $0x38] sm:$0xff] }
  0x11   : > { %v195_v16 = vadd.f32 %v313_v1, %v183_v5  ;;  %v196_v17 = vadd.f32 %v313_v1, %v184_v6  ;;  %v197_v18 = vadd.f32 %v313_v1, %v185_v7  ;;  %v189_v19 = vmul.f32 %v312_v0, %v177_v14 }
  0x12   : > { %v198_v20 = vadd.f32 %v313_v1, %v186_v11  ;;  %v199_v21 = vadd.f32 %v313_v1, %v187_v12  ;;  %v200_v22 = vadd.f32 %v313_v1, %v188_v13  ;;  %v190_v23 = vmul.f32 %v312_v0, %v178_v15 }
  0x13   : > { %vm203_vm1 = vcmp.ge.f32.partialorder %v195_v16, 0.0  ;;  %v211_v24 = vmul.f32 0.01, %v195_v16  ;;  %vm204_vm2 = vcmp.ge.f32.partialorder %v196_v17, 0.0  ;;  %v212_v25 = vmul.f32 0.01, %v196_v17 }
  0x14   : > { %vm205_vm3 = vcmp.ge.f32.partialorder %v197_v18, 0.0  ;;  %v213_v26 = vmul.f32 0.01, %v197_v18  ;;  %vm206_vm4 = vcmp.ge.f32.partialorder %v198_v20, 0.0  ;;  %v214_v27 = vmul.f32 0.01, %v198_v20 }
  0x15   : > { %v219_v28 = vsel %vm203_vm1, %v195_v16, %v211_v24  ;;  %v220_v29 = vsel %vm204_vm2, %v196_v17, %v212_v25  ;;  %vm207_vm5 = vcmp.ge.f32.partialorder %v199_v21, 0.0  ;;  %v215_v30 = vmul.f32 0.01, %v199_v21 }
  0x16   : > { %228 = vst.msk [vmem:[%s365_s24] sm:$0xff] %vm227_vm0, %v219_v28  ;;  %v221_v31 = vsel %vm205_vm3, %v197_v18, %v213_v26  ;;  %v222_v32 = vsel %vm206_vm4, %v198_v20, %v214_v27  ;;  %vm208_vm6 = vcmp.ge.f32.partialorder %v200_v22, 0.0  ;;  %v216_v33 = vmul.f32 0.01, %v200_v22 }
  0x17   : > { %229 = vst.msk [vmem:[%s365_s24 + $0x8] sm:$0xff] %vm227_vm0, %v220_v29  ;;  %v223_v34 = vsel %vm207_vm5, %v199_v21, %v215_v30  ;;  %v201_v35 = vadd.f32 %v313_v1, %v189_v19  ;;  %v202_v36 = vadd.f32 %v313_v1, %v190_v23 }
  0x18   : > { %230 = vst.msk [vmem:[%s365_s24 + $0x10] sm:$0xff] %vm227_vm0, %v221_v31  ;;  %v224_v37 = vsel %vm208_vm6, %v200_v22, %v216_v33 }
  0x19   : > { %231 = vst.msk [vmem:[%s365_s24 + $0x18] sm:$0xff] %vm227_vm0, %v222_v32  ;;  %vm209_vm7 = vcmp.ge.f32.partialorder %v201_v35, 0.0  ;;  %v217_v38 = vmul.f32 0.01, %v201_v35  ;;  %vm210_vm8 = vcmp.ge.f32.partialorder %v202_v36, 0.0 }
  0x1a   : > { %232 = vst.msk [vmem:[%s365_s24 + $0x20] sm:$0xff] %vm227_vm0, %v223_v34  ;;  %v218_v39 = vmul.f32 0.01, %v202_v36 }
  0x1b   : > { %233 = vst.msk [vmem:[%s365_s24 + $0x28] sm:$0xff] %vm227_vm0, %v224_v37  ;;  %v225_v40 = vsel %vm209_vm7, %v201_v35, %v217_v38 }
  0x1c   : > { %234 = vst.msk [vmem:[%s365_s24 + $0x30] sm:$0xff] %vm227_vm0, %v225_v40  ;;  %v226_v41 = vsel %vm210_vm8, %v202_v36, %v218_v39 }
  0x1d   : > { %235 = vst.msk [vmem:[%s365_s24 + $0x38] sm:$0xff] %vm227_vm0, %v226_v41 }
  0x1e PF: > { %s13_s12 = sadd.s32 1, %s320_s12  }
  0x1f   : > { %p10_p4 = scmp.ge.s32.totalorder %s13_s12, 4  }
  0x21   :  { %12 = sbr.rel (!%p10_p4) target bundleno = 1 (0x1), region = 62 }

// kernel: down_block_forward.4
= control target key start
LH: loop header
LB: loop body
LE: loop exit
PB: predicated region body
PF: predicated region fallthrough
CT: control target
= control target key end

     0   :  { %s1333_s24 = smov 0   ;;  %s1778_s0 = inlined_call_operand.vmem [shape: f32[2,64,8], index: 0, kind: input, shape index: {}]   ;;  %s1779_s1 = inlined_call_operand.vmem [shape: f32[1,8], index: 1, kind: input, shape index: {}]   ;;  %s1780_s2 = inlined_call_operand.vmem [shape: f32[1,8], index: 2, kind: input, shape index: {}]   ;;  %s1781_s3 = inlined_call_operand.vmem [shape: f32[3,3,8,8], index: 3, kind: input, shape index: {}]   ;;  %s1782_s4 = inlined_call_operand.vmem [shape: f32[1,8], index: 4, kind: input, shape index: {}]   ;;  %s1783_s5 = inlined_call_operand.vmem [shape: f32[2,64,8], index: 5, kind: output, shape index: {0}]   ;;  %s1784_s6 = inlined_call_operand.vmem [shape: f32[2,1,8], index: 6, kind: output, shape index: {1}]   ;;  %s1785_s7 = inlined_call_operand.vmem [shape: f32[2,1,8], index: 7, kind: output, shape index: {2}]  }
   0x1 LB: > { %s1176_s25 = sadd.s32 4294967295, %s1290_s24   ;;  %p1180_p0 = scmp.ge.s32.totalorder %s1290_s24, 1  ;;  %s1290_s24 = sphi %s1333_s24, %s18_s24  }
   0x2   : > { %p242_p1 = scmp.lt.s32.totalorder %s1290_s24, 3 }
   0x4   : > { %p243_p2 = pnand %p1180_p0, %p242_p1 }
   0x5   : > { %p280_p3 = scmp.lt.s32.totalorder (!%p243_p2), %s1176_s25, 1 }
   0x6   : > { %246 = sbr.rel (%p243_p2) target bundleno = 338 (0x152), region = 40 }
   0xb   : > { %v1185_v0 = vld [vmem:[%s1781_s3 + $0x18] sm:$0xff]  ;;  %vm352_vm0 = vcmask 64512   ;;  %s1787_s25 = smov (!%p280_p3, %s1176_s25), 1  ;;  %v1292_v1 = vmov 0.0   ;;  %v1202_v2 = vld [vmem:[%s1781_s3 + $0x30] sm:$0xff]  ;;  %v1211_v4 = vld [vmem:[%s1781_s3 + $0x8] sm:$0xff]  ;;  %v422_v25 = vlaneseq }
   0xc   : > { %1269 = vmatpush.msra.mxu1 %v1185_v0  ;;  %1270 = vmatpush.msra.mxu2 %v1185_v0  ;;  %359 = vst.msk [vmem:[#allocation2 + $0x30] sm:$0xff] %vm352_vm0, %v1292_v1  ;;  %v1281_v3 = vld [vmem:[%s1779_s1] ss:$0 sm:$0xff]  ;;  %s1267_s13 = sshll.u32 %s1787_s25, 6  ;;  %v1229_v51 = vld [vmem:[%s1781_s3 + $0x38] sm:$0xff]  ;;  %s292_s15 = scalar_lea.vmem %s1784_s6, %s1787_s25  ;;  %vm1039_vm11 = vcmask 57344  }
   0xd   : > { %1271 = vmatpush.msra.mxu3 %v1185_v0  ;;  %477 = vmatpush.msra.mxu0 %v1185_v0  ;;  %360 = vst.msk [vmem:[#allocation2 + $0x38] sm:$0xff] %vm352_vm0, %v1292_v1  ;;  %v435_v5 = vld [vmem:[%s1781_s3] sm:$0xff]  ;;  %s284_s16 = scalar_lea.vmem %s1778_s0, %s1267_s13  ;;  %v1401_v35 = vshrl.u32 %v422_v25, 7  ;;  %s1703_s12 = scalar_lea.vmem %s1783_s5, %s1267_s13 }
   0xe   : > { %567 = vmatpush.msrb.mxu2 %v1202_v2  ;;  %353 = vst.msk [vmem:[#allocation2] sm:$0xff] %vm352_vm0, %v1292_v1  ;;  %521 = vmatpush.msrb.mxu1 %v435_v5  ;;  %v1282_v6 = vld [vmem:[%s1780_s2] ss:$0 sm:$0xff]  ;;  %v298_v7 = vld [vmem:[%s284_s16 + $0x10] sm:$0xff]  ;;  %v299_v11 = vld [vmem:[%s284_s16 + $0x18] sm:$0xff]  ;;  %s295_s18 = scalar_lea.vmem %s1785_s7, %s1787_s25 }
   0xf   : > { %642 = vmatpush.msrb.mxu3 %v1211_v4  ;;  %354 = vst.msk [vmem:[#allocation2 + $0x8] sm:$0xff] %vm352_vm0, %v1292_v1  ;;  %v300_v8 = vld [vmem:[%s284_s16 + $0x20] sm:$0xff]  ;;  %v302_v9 = vld [vmem:[%s284_s16 + $0x30] sm:$0xff]  ;;  %v310_v10 = vmul.f32 %v1281_v3, %v298_v7  ;;  %v301_v13 = vld [vmem:[%s284_s16 + $0x28] sm:$0xff]  ;;  %v311_v17 = vmul.f32 %v1281_v3, %v299_v11  ;;  %vm424_vm6 = vcmp.lt.s32.totalorder %v1401_v35, 1  ;;  %vm804_vm10 = vcmp.lt.s32.totalorder %v1401_v35, 7 }
  0x10   : > { %355 = vst.msk [vmem:[#allocation2 + $0x10] sm:$0xff] %vm352_vm0, %v1292_v1  ;;  %v312_v12 = vmul.f32 %v1281_v3, %v300_v8  ;;  %v314_v15 = vmul.f32 %v1281_v3, %v302_v9  ;;  %v296_v16 = vld [vmem:[%s284_s16] sm:$0xff]  ;;  %v303_v18 = vld [vmem:[%s284_s16 + $0x38] sm:$0xff]  ;;  %v313_v20 = vmul.f32 %v1281_v3, %v301_v13  ;;  %v297_v21 = vld [vmem:[%s284_s16 + $0x8] sm:$0xff] }
  0x11   : > { %356 = vst.msk [vmem:[#allocation2 + $0x18] sm:$0xff] %vm352_vm0, %v1292_v1  ;;  %v322_v14 = vadd.f32 %v1282_v6, %v310_v10  ;;  %v308_v23 = vmul.f32 %v1281_v3, %v296_v16  ;;  %v315_v27 = vmul.f32 %v1281_v3, %v303_v18  ;;  %v1220_v28 = vld [vmem:[%s1781_s3 + $0x20] sm:$0xff]  ;;  %v323_v29 = vadd.f32 %v1282_v6, %v311_v17  ;;  %v1238_v5 = vld [vmem:[%s1781_s3 + $0x10] sm:$0xff]  ;;  %v1247_v11 = vld [vmem:[%s1781_s3 + $0x28] sm:$0xff] }
  0x12   : > { %357 = vst.msk [vmem:[#allocation2 + $0x20] sm:$0xff] %vm352_vm0, %v1292_v1  ;;  %v324_v22 = vadd.f32 %v1282_v6, %v312_v12  ;;  %v326_v26 = vadd.f32 %v1282_v6, %v314_v15  ;;  %696 = vmatpush.msrb.mxu0 %v1220_v28  ;;  %v309_v30 = vmul.f32 %v1281_v3, %v297_v21 }
  0x13   : > { %358 = vst.msk [vmem:[#allocation2 + $0x28] sm:$0xff] %vm352_vm0, %v1292_v1  ;;  %vm330_vm1 = vcmp.ge.f32.partialorder %v322_v14, 0.0  ;;  %v338_v19 = vmul.f32 0.01, %v322_v14  ;;  %v325_v31 = vadd.f32 %v1282_v6, %v313_v20  ;;  %v320_v33 = vadd.f32 %v1282_v6, %v308_v23  ;;  %v1256_v23 = vld [vmem:[%s1781_s3 + $0x40] sm:$0xff] }
  0x14   : > { %361 = vst.msk [vmem:[#allocation2 + $0x40] sm:$0xff] %vm352_vm0, %v1292_v1  ;;  %v340_v32 = vmul.f32 0.01, %v324_v22  ;;  %v1399_v34 = vld [vmem:[#allocation2 + $0x38] sm:$0xff]  ;;  %vm332_vm2 = vcmp.ge.f32.partialorder %v324_v22, 0.0  ;;  %v327_v37 = vadd.f32 %v1282_v6, %v315_v27  ;;  %vm334_vm3 = vcmp.ge.f32.partialorder %v326_v26, 0.0 }
  0x15   : > { %362 = vst.msk [vmem:[#allocation2 + $0x48] sm:$0xff] %vm352_vm0, %v1292_v1  ;;  %v346_v24 = vsel %vm330_vm1, %v322_v14, %v338_v19  ;;  %v342_v36 = vmul.f32 0.01, %v326_v26  ;;  %v339_v38 = vmul.f32 0.01, %v323_v29  ;;  %v321_v39 = vadd.f32 %v1282_v6, %v309_v30  ;;  %v382_v14 = vld [vmem:[#allocation2] sm:$0xff] }
  0x16   : > { %363 = vst.msk [vmem:[#allocation2 + $0x50] sm:$0xff] %vm352_vm0, %v1292_v1  ;;  %vm331_vm4 = vcmp.ge.f32.partialorder %v323_v29, 0.0  ;;  %v341_v40 = vmul.f32 0.01, %v325_v31  ;;  %v415_v41 = vrot.slane %v1399_v34, 7  ;;  %v348_v42 = vsel %vm332_vm2, %v324_v22, %v340_v32  ;;  %v383_v15 = vld [vmem:[#allocation2 + $0x8] sm:$0xff] }
  0x17   : > { %364 = vst.msk [vmem:[#allocation2 + $0x58] sm:$0xff] %vm352_vm0, %v1292_v1  ;;  %vm333_vm5 = vcmp.ge.f32.partialorder %v325_v31, 0.0  ;;  %v336_v43 = vmul.f32 0.01, %v320_v33  ;;  %v350_v45 = vsel %vm334_vm3, %v326_v26, %v342_v36  ;;  %vm328_vm7 = vcmp.ge.f32.partialorder %v320_v33, 0.0 }
  0x18   : > { %376 = vst.msk [vmem:[#allocation2 + $0x30] sm:$0xff] %vm352_vm0, %v346_v24  ;;  %v343_v46 = vmul.f32 0.01, %v327_v37  ;;  %v347_v48 = vsel %vm331_vm4, %v323_v29, %v339_v38  ;;  %vm335_vm8 = vcmp.ge.f32.partialorder %v327_v37, 0.0  ;;  %v337_v49 = vmul.f32 0.01, %v321_v39 }
  0x19   : > { %365 = vst.msk [vmem:[#allocation2 + $0x60] sm:$0xff] %vm352_vm0, %v1292_v1  ;;  %v349_v50 = vsel %vm333_vm5, %v325_v31, %v341_v40  ;;  %vm329_vm9 = vcmp.ge.f32.partialorder %v321_v39, 0.0  ;;  %v344_v53 = vsel %vm328_vm7, %v320_v33, %v336_v43  ;;  %v1446_v62 = vld [vmem:[#allocation2 + $0x18] sm:$0xff]  ;;  %v402_v25 = vrot.slane %v382_v14, 7 }
  0x1a   : > { %366 = vst.msk [vmem:[#allocation2 + $0x68] sm:$0xff] %vm352_vm0, %v1292_v1  ;;  %v351_v54 = vsel %vm335_vm8, %v327_v37, %v343_v46  ;;  %v345_v56 = vsel %vm329_vm9, %v321_v39, %v337_v49  ;;  %v413_v9 = vrot.slane %v1446_v62, 7  ;;  %v412_v26 = vrot.slane %v383_v15, 7  ;;  %v387_v28 = vld [vmem:[#allocation2 + $0x28] sm:$0xff] }
  0x1b   : > { %367 = vst.msk [vmem:[#allocation2 + $0x70] sm:$0xff] %vm352_vm0, %v1292_v1  ;;  %v414_v33 = vrot.slane %v387_v28, 7  ;;  %v794_v37 = vrot.slane %v383_v15, 1  ;;  %v784_v38 = vrot.slane %v382_v14, 1  ;;  %v795_v40 = vrot.slane %v1446_v62, 1 }
  0x1c   : > { %368 = vst.msk [vmem:[#allocation2 + $0x78] sm:$0xff] %vm352_vm0, %v1292_v1  ;;  %v1438_v58 = vld [vmem:[#allocation2 + $0x48] sm:$0xff]  ;;  %v425_v31 = vsel %vm424_vm6, %v412_v26, %v402_v25 }
  0x1d   : > { %369 = vst.msk [vmem:[#allocation2 + $0x80] sm:$0xff] %vm352_vm0, %v1292_v1  ;;  %v805_v39 = vsel %vm804_vm10, %v784_v38, %v794_v37 }
  0x1e   : > { %370 = vst.msk [vmem:[#allocation2 + $0x88] sm:$0xff] %vm352_vm0, %v1292_v1  ;;  %v1432_v55 = vld [vmem:[#allocation2 + $0x58] sm:$0xff] }
  0x1f   : > { %v1412_v44 = vld [vmem:[#allocation2 + $0x30] sm:$0xff]  ;;  %371 = vst.msk [vmem:[#allocation2 + $0x90] sm:$0xff] %vm352_vm0, %v1292_v1  ;;  %v417_v59 = vrot.slane %v1432_v55, 7 }
  0x20   : > { %v405_v47 = vrot.slane %v1412_v44, 7  ;;  %372 = vst.msk [vmem:[#allocation2 + $0x98] sm:$0xff] %vm352_vm0, %v1292_v1  ;;  %v416_v1 = vrot.slane %v1438_v58, 7 }
  0x21   : > { %378 = vst.msk [vmem:[#allocation2 + $0x50] sm:$0xff] %vm352_vm0, %v348_v42  ;;  %v1455_v4 = vld [vmem:[#allocation2 + $0x68] sm:$0xff] }
  0x22   : > { %v1426_v52 = vsel %vm424_vm6, %v415_v41, %v405_v47  ;;  %380 = vst.msk [vmem:[#allocation2 + $0x70] sm:$0xff] %vm352_vm0, %v350_v45  ;;  %v418_v18 = vrot.slane %v1455_v4, 7 }
  0x23   : > { %1188 = vmatmul.msk.f32.vlgmr.msra.gmra.mxu1 %vm352_vm0, %v1426_v52  ;;  %377 = vst.msk [vmem:[#allocation2 + $0x40] sm:$0xff] %vm352_vm0, %v347_v48  ;;  %v1435_v57 = vld [vmem:[#allocation2 + $0x78] sm:$0xff] }
  0x24   : > { %379 = vst.msk [vmem:[#allocation2 + $0x60] sm:$0xff] %vm352_vm0, %v349_v50  ;;  %750 = vmatpush.msra.mxu1 %v1229_v51  ;;  %v419_v61 = vrot.slane %v1435_v57, 7  ;;  %v796_v50 = vrot.slane %v387_v28, 1 }
  0x25   : > { %374 = vst.msk [vmem:[#allocation2 + $0x10] sm:$0xff] %vm352_vm0, %v344_v53  ;;  %v1468_v10 = vld [vmem:[#allocation2 + $0x88] sm:$0xff]  ;;  %v797_v53 = vrot.slane %v1399_v34, 1 }
  0x26   : > { %381 = vst.msk [vmem:[#allocation2 + $0x80] sm:$0xff] %vm352_vm0, %v351_v54  ;;  %v420_v22 = vrot.slane %v1468_v10, 7  ;;  %v1555_v43 = vld [vmem:[#allocation2 + $0x90] sm:$0xff] }
  0x27   : > { %375 = vst.msk [vmem:[#allocation2 + $0x20] sm:$0xff] %vm352_vm0, %v345_v56  ;;  %v1557_v45 = vld [vmem:[#allocation2 + $0x98] sm:$0xff]  ;;  %v411_v46 = vrot.slane %v1555_v43, 7 }
  0x28   : > { %v1443_v60 = vld [vmem:[#allocation2 + $0x50] sm:$0xff]  ;;  %v421_v47 = vrot.slane %v1557_v45, 7 }
  0x29   : > { %v407_v63 = vrot.slane %v1443_v60, 7  ;;  %v1449_v0 = vld [vmem:[#allocation2 + $0x70] sm:$0xff] }
  0x2a   : > { %v409_v2 = vrot.slane %v1449_v0, 7  ;;  %v1453_v3 = vld [vmem:[#allocation2 + $0x40] sm:$0xff]  ;;  %v434_v48 = vsel %vm424_vm6, %v421_v47, %v411_v46 }
  0x2b   : > { %v1462_v6 = vsel %vm424_vm6, %v417_v59, %v407_v63  ;;  %v406_v7 = vrot.slane %v1453_v3, 7  ;;  %v1465_v8 = vld [vmem:[#allocation2 + $0x60] sm:$0xff]  ;;  %v788_v56 = vrot.slane %v1453_v3, 1  ;;  %v798_v59 = vrot.slane %v1438_v58, 1 }
  0x2c   : > { %1190 = vmatmul.msk.f32.vlgmr.msra.gmra.mxu2 %vm352_vm0, %v1462_v6  ;;  %v1477_v12 = vsel %vm424_vm6, %v419_v61, %v409_v2  ;;  %v384_v13 = vld [vmem:[#allocation2 + $0x10] sm:$0xff]  ;;  %v408_v17 = vrot.slane %v1465_v8, 7  ;;  %v799_v61 = vrot.slane %v1432_v55, 1  ;;  %v790_v62 = vrot.slane %v1465_v8, 1 }
  0x2d   : > { %1192 = vmatmul.msk.f32.vlgmr.msra.gmra.mxu3 %vm352_vm0, %v1477_v12  ;;  %v429_v16 = vsel %vm424_vm6, %v416_v1, %v406_v7  ;;  %v403_v19 = vrot.slane %v384_v13, 7  ;;  %v1485_v20 = vld [vmem:[#allocation2 + $0x80] sm:$0xff]  ;;  %856 = vmatpush.msra.mxu2 %v1238_v5  ;;  %v785_v41 = vrot.slane %v384_v13, 1  ;;  %v809_v34 = vsel %vm804_vm10, %v788_v56, %v798_v59 }
  0x2e   : > { %1189 = vmatmul.msk.f32.gmra.mxu1 %vm352_vm0, %v429_v16  ;;  %v410_v21 = vrot.slane %v1485_v20, 7  ;;  %910 = vmatpush.msra.mxu3 %v1247_v11  ;;  %v1496_v27 = vld [vmem:[#allocation2 + $0x20] sm:$0xff]  ;;  %v431_v29 = vsel %vm424_vm6, %v418_v18, %v408_v17  ;;  %v800_v63 = vrot.slane %v1455_v4, 1  ;;  %v791_v1 = vrot.slane %v1449_v0, 1 }
  0x2f   : > { %v426_v24 = vsel %vm424_vm6, %v413_v9, %v403_v19  ;;  %v404_v32 = vrot.slane %v1496_v27, 7  ;;  %v806_v42 = vsel %vm804_vm10, %v785_v41, %v795_v40  ;;  %v786_v49 = vrot.slane %v1496_v27, 1 }
  0x30   : > { %1186 = vmatmul.msk.f32.vlgmr.msra.gmra.mxu0 %vm352_vm0, %v426_v24  ;;  %v433_v30 = vsel %vm424_vm6, %v420_v22, %v410_v21  ;;  %v811_v55 = vsel %vm804_vm10, %v790_v62, %v800_v63  ;;  %v801_v2 = vrot.slane %v1435_v57, 1  ;;  %v792_v4 = vrot.slane %v1485_v20, 1 }
  0x31   : > { %964 = vmatpush.msra.mxu0 %v1256_v23  ;;  %v427_v36 = vsel %vm424_vm6, %v414_v33, %v404_v32  ;;  %v807_v51 = vsel %vm804_vm10, %v786_v49, %v796_v50  ;;  %v802_v5 = vrot.slane %v1468_v10, 1  ;;  %v793_v9 = vrot.slane %v1555_v43, 1 }
  0x32   : > { %v803_v10 = vrot.slane %v1557_v45, 1 }
  0x34   : > { %1191 = vmatmul.msk.f32.gmra.mxu2 %vm352_vm0, %v431_v29 }
  0x35   : > { %1193 = vmatmul.msk.f32.gmra.mxu3 %vm352_vm0, %v433_v30 }
  0x36   : > { %1194 = vmatmul.msk.f32.vlgmr.msrb.gmra.mxu1 %vm352_vm0, %v425_v31 }
  0x38   : > { %1187 = vmatmul.msk.f32.gmra.mxu0 %vm352_vm0, %v427_v36 }
  0x3c   : > { %1203 = vmatmul.msk.f32.vlgmr.msrb.gmra.mxu2 %vm352_vm0, %v427_v36 }
  0x3d   : > { %1212 = vmatmul.msk.f32.vlgmr.msrb.gmra.mxu3 %vm352_vm0, %v382_v14 }
  0x3e   : > { %1195 = vmatmul.msk.f32.gmra.mxu1 %vm352_vm0, %v426_v24 }
  0x40   : > { %1221 = vmatmul.msk.f32.vlgmr.msrb.gmra.mxu0 %vm352_vm0, %v384_v13 }
  0x44   : > { %1204 = vmatmul.msk.f32.gmra.mxu2 %vm352_vm0, %v1426_v52 }
  0x45   : > { %1213 = vmatmul.msk.f32.gmra.mxu3 %vm352_vm0, %v384_v13  ;;  %v814_v13 = vsel %vm804_vm10, %v793_v9, %v803_v10 }
  0x46   : > { %1196 = vmatmul.msk.f32.gmra.mxu1 %vm352_vm0, %v427_v36 }
  0x48   : > { %1222 = vmatmul.msk.f32.gmra.mxu0 %vm352_vm0, %v1496_v27 }
  0x4c   : > { %1205 = vmatmul.msk.f32.gmra.mxu2 %vm352_vm0, %v429_v16 }
  0x4d   : > { %1214 = vmatmul.msk.f32.gmra.mxu3 %vm352_vm0, %v1496_v27 }
  0x4e   : > { %1197 = vmatmul.msk.f32.gmra.mxu1 %vm352_vm0, %v1426_v52  ;;  %v787_v52 = vrot.slane %v1412_v44, 1 }
  0x50   : > { %1223 = vmatmul.msk.f32.gmra.mxu0 %vm352_vm0, %v1412_v44  ;;  %v808_v54 = vsel %vm804_vm10, %v787_v52, %v797_v53 }
  0x54   : > { %1206 = vmatmul.msk.f32.gmra.mxu2 %vm352_vm0, %v1462_v6 }
  0x55   : > { %1215 = vmatmul.msk.f32.gmra.mxu3 %vm352_vm0, %v1412_v44 }
  0x56   : > { %1198 = vmatmul.msk.f32.gmra.mxu1 %vm352_vm0, %v429_v16 }
  0x58   : > { %1224 = vmatmul.msk.f32.gmra.mxu0 %vm352_vm0, %v1453_v3 }
  0x5c   : > { %1207 = vmatmul.msk.f32.gmra.mxu2 %vm352_vm0, %v431_v29 }
  0x5d   : > { %1216 = vmatmul.msk.f32.gmra.mxu3 %vm352_vm0, %v1453_v3 }
  0x5e   : > { %1199 = vmatmul.msk.f32.gmra.mxu1 %vm352_vm0, %v1462_v6 }
  0x60   : > { %1225 = vmatmul.msk.f32.gmra.mxu0 %vm352_vm0, %v1443_v60 }
  0x64   : > { %1208 = vmatmul.msk.f32.gmra.mxu2 %vm352_vm0, %v1477_v12 }
  0x65   : > { %1217 = vmatmul.msk.f32.gmra.mxu3 %vm352_vm0, %v1443_v60 }
  0x66   : > { %1200 = vmatmul.msk.f32.gmra.mxu1 %vm352_vm0, %v431_v29 }
  0x68   : > { %1226 = vmatmul.msk.f32.gmra.mxu0 %vm352_vm0, %v1465_v8 }
  0x6c   : > { %1209 = vmatmul.msk.f32.gmra.mxu2 %vm352_vm0, %v433_v30 }
  0x6d   : > { %1218 = vmatmul.msk.f32.gmra.mxu3 %vm352_vm0, %v1465_v8 }
  0x6e   : > { %1201 = vmatmul.msk.f32.gmra.mxu1 %vm352_vm0, %v1477_v12 }
  0x70   : > { %1227 = vmatmul.msk.f32.gmra.mxu0 %vm352_vm0, %v1449_v0 }
  0x74   : > { %1210 = vmatmul.msk.f32.gmra.mxu2 %vm352_vm0, %v434_v48 }
  0x75   : > { %1219 = vmatmul.msk.f32.gmra.mxu3 %vm352_vm0, %v1449_v0 }
  0x76   : > { %1230 = vmatmul.msk.f32.vlgmr.msra.gmra.mxu1 %vm352_vm0, %v1496_v27 }
  0x78   : > { %1228 = vmatmul.msk.f32.gmra.mxu0 %vm352_vm0, %v1485_v20 }
  0x7c   : > { %1239 = vmatmul.msk.f32.vlgmr.msra.gmra.mxu2 %vm352_vm0, %v805_v39 }
  0x7d   : > { %1248 = vmatmul.msk.f32.vlgmr.msra.gmra.mxu3 %vm352_vm0, %v806_v42 }
  0x7e   : > { %1231 = vmatmul.msk.f32.gmra.mxu1 %vm352_vm0, %v1412_v44  ;;  %v789_v44 = vrot.slane %v1443_v60, 1 }
  0x80   : > { %1257 = vmatmul.msk.f32.vlgmr.msra.gmra.mxu0 %vm352_vm0, %v807_v51  ;;  %v810_v58 = vsel %vm804_vm10, %v789_v44, %v799_v61 }
  0x84   : > { %1240 = vmatmul.msk.f32.gmra.mxu2 %vm352_vm0, %v806_v42 }
  0x85   : > { %1249 = vmatmul.msk.f32.gmra.mxu3 %vm352_vm0, %v807_v51 }
  0x86   : > { %1232 = vmatmul.msk.f32.gmra.mxu1 %vm352_vm0, %v1453_v3  ;;  %v812_v3 = vsel %vm804_vm10, %v791_v1, %v801_v2  ;;  %v1696_v2 = vld [vmem:[%s1782_s4] ss:$0 sm:$0xff] }
  0x88   : > { %1258 = vmatmul.msk.f32.gmra.mxu0 %vm352_vm0, %v808_v54 }
  0x8c   : > { %1241 = vmatmul.msk.f32.gmra.mxu2 %vm352_vm0, %v807_v51 }
  0x8d   : > { %1250 = vmatmul.msk.f32.gmra.mxu3 %vm352_vm0, %v808_v54 }
  0x8e   : > { %1233 = vmatmul.msk.f32.gmra.mxu1 %vm352_vm0, %v1443_v60 }
  0x90   : > { %1259 = vmatmul.msk.f32.gmra.mxu0 %vm352_vm0, %v809_v34 }
  0x94   : > { %1242 = vmatmul.msk.f32.gmra.mxu2 %vm352_vm0, %v808_v54 }
  0x95   : > { %1251 = vmatmul.msk.f32.gmra.mxu3 %vm352_vm0, %v809_v34 }
  0x96   : > { %1234 = vmatmul.msk.f32.gmra.mxu1 %vm352_vm0, %v1465_v8 }
  0x98   : > { %1260 = vmatmul.msk.f32.gmra.mxu0 %vm352_vm0, %v810_v58 }
  0x9c   : > { %1243 = vmatmul.msk.f32.gmra.mxu2 %vm352_vm0, %v809_v34 }
  0x9d   : > { %1252 = vmatmul.msk.f32.gmra.mxu3 %vm352_vm0, %v810_v58 }
  0x9e   : > { %1235 = vmatmul.msk.f32.gmra.mxu1 %vm352_vm0, %v1449_v0  ;;  %v813_v0 = vsel %vm804_vm10, %v792_v4, %v802_v5 }
  0xa0   : > { %1261 = vmatmul.msk.f32.gmra.mxu0 %vm352_vm0, %v811_v55  ;;  %v1621_v60 = vpop.f32.mrf.mxu1 }
  0xa4   : > { %1244 = vmatmul.msk.f32.gmra.mxu2 %vm352_vm0, %v810_v58 }
  0xa5   : > { %1253 = vmatmul.msk.f32.gmra.mxu3 %vm352_vm0, %v811_v55 }
  0xa6   : > { %1236 = vmatmul.msk.f32.gmra.mxu1 %vm352_vm0, %v1485_v20 }
  0xa8   : > { %1262 = vmatmul.msk.f32.gmra.mxu0 %vm352_vm0, %v812_v3 }
  0xab   : > { %v1634_v6 = vpop.f32.mrf.mxu1 }
  0xac   : > { %1245 = vmatmul.msk.f32.gmra.mxu2 %vm352_vm0, %v811_v55 }
  0xad   : > { %1254 = vmatmul.msk.f32.gmra.mxu3 %vm352_vm0, %v812_v3  ;;  %v479_v57 = vpop.f32.mrf.mxu0 }
  0xae   : > { %1237 = vmatmul.msk.f32.gmra.mxu1 %vm352_vm0, %v1555_v43 }
  0xaf   : > { %v1642_v7 = vpop.f32.mrf.mxu2 }
  0xb0   : > { %v1644_v8 = vpop.f32.mrf.mxu3  ;;  %1263 = vmatmul.msk.f32.gmra.mxu0 %vm352_vm0, %v813_v0 }
  0xb3   : > { %v523_v11 = vpop.f32.mrf.mxu1 }
  0xb4   : > { %1246 = vmatmul.msk.f32.gmra.mxu2 %vm352_vm0, %v812_v3  ;;  %v524_v46 = vadd.f32 %v523_v11, %v479_v57 }
  0xb5   : > { %1255 = vmatmul.msk.f32.gmra.mxu3 %vm352_vm0, %v813_v0  ;;  %v482_v12 = vpop.f32.mrf.mxu0 }
  0xb7   : > { %v1653_v14 = vpop.f32.mrf.mxu2 }
  0xb8   : > { %v1655_v15 = vpop.f32.mrf.mxu3  ;;  %1264 = vmatmul.msk.f32.gmra.mxu0 %vm352_vm0, %v814_v13 }
  0xbb   : > { %v526_v16 = vpop.f32.mrf.mxu1 }
  0xbc   : > { %v527_v53 = vadd.f32 %v526_v16, %v482_v12 }
  0xbd   : > { %v698_v17 = vpop.f32.mrf.mxu0 }
  0xbf   : > { %v569_v18 = vpop.f32.mrf.mxu2 }
  0xc0   : > { %v644_v19 = vpop.f32.mrf.mxu3  ;;  %v593_v48 = vadd.f32 %v569_v18, %v524_v46 }
  0xc2   : > { %v668_v51 = vadd.f32 %v644_v19, %v593_v48 }
  0xc3   : > { %v529_v20 = vpop.f32.mrf.mxu1 }
  0xc4   : > { %v722_v56 = vadd.f32 %v698_v17, %v668_v51  ;;  %v530_v55 = vadd.f32 %v529_v20, %v1621_v60 }
  0xc5   : > { %v701_v21 = vpop.f32.mrf.mxu0 }
  0xc7   : > { %v572_v22 = vpop.f32.mrf.mxu2 }
  0xc8   : > { %v647_v23 = vpop.f32.mrf.mxu3  ;;  %v594_v59 = vadd.f32 %v572_v22, %v527_v53 }
  0xca   : > { %v669_v58 = vadd.f32 %v647_v23, %v594_v59 }
  0xcb   : > { %v532_v24 = vpop.f32.mrf.mxu1 }
  0xcc   : > { %v723_v4 = vadd.f32 %v701_v21, %v669_v58  ;;  %v533_v16 = vadd.f32 %v532_v24, %v1634_v6 }
  0xcd   : > { %v704_v25 = vpop.f32.mrf.mxu0 }
  0xcf   : > { %v575_v26 = vpop.f32.mrf.mxu2 }
  0xd0   : > { %v650_v27 = vpop.f32.mrf.mxu3  ;;  %v595_v5 = vadd.f32 %v575_v26, %v530_v55 }
  0xd2   : > { %v670_v11 = vadd.f32 %v650_v27, %v595_v5 }
  0xd3   : > { %v1658_v35 = vpop.f32.mrf.mxu1 }
  0xd4   : > { %v724_v20 = vadd.f32 %v704_v25, %v670_v11  ;;  %v536_v25 = vadd.f32 %v1658_v35, %v1642_v7 }
  0xd5   : > { %v1660_v28 = vpop.f32.mrf.mxu0 }
  0xd7   : > { %v578_v29 = vpop.f32.mrf.mxu2 }
  0xd8   : > { %v653_v30 = vpop.f32.mrf.mxu3  ;;  %v596_v18 = vadd.f32 %v578_v29, %v533_v16 }
  0xdb   : > { %v1662_v31 = vpop.f32.mrf.mxu1 }
  0xdd   : > { %v1664_v32 = vpop.f32.mrf.mxu0 }
  0xdf   : > { %v1666_v33 = vpop.f32.mrf.mxu2 }
  0xe0   : > { %v1668_v36 = vpop.f32.mrf.mxu3 }
  0xe3   : > { %v1670_v37 = vpop.f32.mrf.mxu1 }
  0xe5   : > { %v1672_v38 = vpop.f32.mrf.mxu0 }
  0xe7   : > { %v1674_v39 = vpop.f32.mrf.mxu2 }
  0xe8   : > { %v1676_v40 = vpop.f32.mrf.mxu3 }
  0xeb   : > { %v1678_v41 = vpop.f32.mrf.mxu1 }
  0xed   : > { %v1680_v42 = vpop.f32.mrf.mxu0 }
  0xef   : > { %v1682_v43 = vpop.f32.mrf.mxu2 }
  0xf0   : > { %v1684_v45 = vpop.f32.mrf.mxu3 }
  0xf3   : > { %v752_v47 = vpop.f32.mrf.mxu1 }
  0xf4   : > { %v776_v44 = vadd.f32 %v752_v47, %v722_v56  ;;  %v671_v47 = vadd.f32 %v653_v30, %v596_v18 }
  0xf5   : > { %v1686_v49 = vpop.f32.mrf.mxu0 }
  0xf7   : > { %v1688_v50 = vpop.f32.mrf.mxu2 }
  0xf8   : > { %v1690_v52 = vpop.f32.mrf.mxu3 }
  0xfb   : > { %v755_v54 = vpop.f32.mrf.mxu1 }
  0xfc   : > { %v777_v9 = vadd.f32 %v755_v54, %v723_v4 }
  0xfd   : > { %v966_v34 = vpop.f32.mrf.mxu0 }
  0xff   : > { %v858_v61 = vpop.f32.mrf.mxu2 }
 0x100   : > { %v882_v62 = vadd.f32 %v858_v61, %v776_v44  ;;  %v912_v63 = vpop.f32.mrf.mxu3  ;;  %v597_v44 = vadd.f32 %v1666_v33, %v536_v25  ;;  %v539_v33 = vadd.f32 %v1662_v31, %v1653_v14 }
 0x102   : > { %v936_v1 = vadd.f32 %v912_v63, %v882_v62 }
 0x103   : > { %v758_v3 = vpop.f32.mrf.mxu1 }
 0x104   : > { %v990_v57 = vadd.f32 %v966_v34, %v936_v1  ;;  %v778_v26 = vadd.f32 %v758_v3, %v724_v20  ;;  %v725_v34 = vadd.f32 %v1660_v28, %v671_v47  ;;  %v672_v3 = vadd.f32 %v1668_v36, %v597_v44 }
 0x105   : > { %v969_v0 = vpop.f32.mrf.mxu0  ;;  %v598_v36 = vadd.f32 %v1674_v39, %v539_v33  ;;  %v542_v39 = vadd.f32 %v1670_v37, %v1644_v8 }
 0x106   : > { %v1002_v60 = vadd.f32 %v1696_v2, %v990_v57 }
 0x107   : > { %v861_v10 = vpop.f32.mrf.mxu2  ;;  %v673_v18 = vadd.f32 %v1676_v40, %v598_v36  ;;  %v599_v40 = vadd.f32 %v1682_v43, %v542_v39  ;;  %v545_v43 = vadd.f32 %v1678_v41, %v1655_v15 }
 0x108   : > { %1010 = vst.msk [vmem:[%s1703_s12] sm:$0xff] %vm352_vm0, %v1002_v60  ;;  %v883_v12 = vadd.f32 %v861_v10, %v777_v9  ;;  %v915_v13 = vpop.f32.mrf.mxu3  ;;  %v1041_v23 = vmul.f32 %v1002_v60, %v1002_v60  ;;  %v1018_v27 = vsel %vm352_vm0, %v1002_v60, 0.0  ;;  %v726_v60 = vadd.f32 %v1664_v32, %v672_v3 }
 0x10a   : > { %v937_v17 = vadd.f32 %v915_v13, %v883_v12  ;;  %v1049_v54 = vsel %vm352_vm0, %v1041_v23, 0.0 }
 0x10b   : > { %v761_v19 = vpop.f32.mrf.mxu1 }
 0x10c   : > { %v991_v21 = vadd.f32 %v969_v0, %v937_v17  ;;  %v779_v63 = vadd.f32 %v761_v19, %v725_v34 }
 0x10d   : > { %v972_v22 = vpop.f32.mrf.mxu0 }
 0x10e   : > { %v1003_v46 = vadd.f32 %v1696_v2, %v991_v21 }
 0x10f   : > { %v864_v48 = vpop.f32.mrf.mxu2 }
 0x110   : > { %1011 = vst.msk [vmem:[%s1703_s12 + $0x8] sm:$0xff] %vm352_vm0, %v1003_v46  ;;  %v1019_v51 = vsel %vm352_vm0, %v1003_v46, 0.0  ;;  %v1042_v53 = vmul.f32 %v1003_v46, %v1003_v46  ;;  %v884_v6 = vadd.f32 %v864_v48, %v778_v26  ;;  %v918_v24 = vpop.f32.mrf.mxu3  ;;  %v727_v26 = vadd.f32 %v1672_v38, %v673_v18 }
 0x111   : > { %v1020_v29 = vadd.f32 %v1019_v51, %v1018_v27 }
 0x112   : > { %v1050_v56 = vsel %vm352_vm0, %v1042_v53, 0.0  ;;  %v938_v30 = vadd.f32 %v918_v24, %v884_v6  ;;  %v674_v53 = vadd.f32 %v1684_v45, %v599_v40  ;;  %v600_v45 = vadd.f32 %v1688_v50, %v545_v43 }
 0x113   : > { %v1051_v59 = vadd.f32 %v1050_v56, %v1049_v54  ;;  %v764_v58 = vpop.f32.mrf.mxu1 }
 0x114   : > { %v992_v61 = vadd.f32 %v972_v22, %v938_v30  ;;  %v780_v12 = vadd.f32 %v764_v58, %v726_v60  ;;  %v728_v30 = vadd.f32 %v1680_v42, %v674_v53 }
 0x115   : > { %v975_v62 = vpop.f32.mrf.mxu0 }
 0x116   : > { %v1004_v55 = vadd.f32 %v1696_v2, %v992_v61 }
 0x117   : > { %v867_v1 = vpop.f32.mrf.mxu2 }
 0x118   : > { %1012 = vst.msk [vmem:[%s1703_s12 + $0x10] sm:$0xff] %vm352_vm0, %v1004_v55  ;;  %v1021_v7 = vsel %vm352_vm0, %v1004_v55, 0.0  ;;  %v1043_v35 = vmul.f32 %v1004_v55, %v1004_v55  ;;  %v885_v4 = vadd.f32 %v867_v1, %v779_v63  ;;  %v921_v5 = vpop.f32.mrf.mxu3 }
 0x119   : > { %v1022_v28 = vadd.f32 %v1021_v7, %v1020_v29 }
 0x11a   : > { %v1052_v57 = vsel %vm352_vm0, %v1043_v35, 0.0  ;;  %v939_v0 = vadd.f32 %v921_v5, %v885_v4 }
 0x11b   : > { %v1053_v9 = vadd.f32 %v1052_v57, %v1051_v59  ;;  %v767_v17 = vpop.f32.mrf.mxu1 }
 0x11c   : > { %v993_v10 = vadd.f32 %v975_v62, %v939_v0  ;;  %v781_v48 = vadd.f32 %v767_v17, %v727_v26  ;;  %v675_v62 = vadd.f32 %v1690_v52, %v600_v45 }
 0x11d   : > { %v978_v11 = vpop.f32.mrf.mxu0 }
 0x11e   : > { %v1005_v13 = vadd.f32 %v1696_v2, %v993_v10  ;;  %v729_v35 = vadd.f32 %v1686_v49, %v675_v62 }
 0x11f   : > { %v870_v16 = vpop.f32.mrf.mxu2 }
 0x120   : > { %1013 = vst.msk [vmem:[%s1703_s12 + $0x18] sm:$0xff] %vm352_vm0, %v1005_v13  ;;  %v1023_v14 = vsel %vm352_vm0, %v1005_v13, 0.0  ;;  %v1044_v31 = vmul.f32 %v1005_v13, %v1005_v13  ;;  %v886_v19 = vadd.f32 %v870_v16, %v780_v12  ;;  %v924_v20 = vpop.f32.mrf.mxu3 }
 0x121   : > { %v1024_v32 = vadd.f32 %v1023_v14, %v1022_v28 }
 0x122   : > { %v1054_v21 = vsel %vm352_vm0, %v1044_v31, 0.0  ;;  %v940_v22 = vadd.f32 %v924_v20, %v886_v19 }
 0x123   : > { %v1055_v23 = vadd.f32 %v1054_v21, %v1053_v9  ;;  %v770_v38 = vpop.f32.mrf.mxu1 }
 0x124   : > { %v994_v46 = vadd.f32 %v978_v11, %v940_v22  ;;  %v782_v34 = vadd.f32 %v770_v38, %v728_v30 }
 0x125   : > { %v981_v47 = vpop.f32.mrf.mxu0 }
 0x126   : > { %v1006_v27 = vadd.f32 %v1696_v2, %v994_v46 }
 0x127   : > { %v873_v51 = vpop.f32.mrf.mxu2 }
 0x128   : > { %1014 = vst.msk [vmem:[%s1703_s12 + $0x20] sm:$0xff] %vm352_vm0, %v1006_v27  ;;  %v1025_v8 = vsel %vm352_vm0, %v1006_v27, 0.0  ;;  %v1045_v37 = vmul.f32 %v1006_v27, %v1006_v27  ;;  %v887_v6 = vadd.f32 %v873_v51, %v781_v48  ;;  %v927_v24 = vpop.f32.mrf.mxu3 }
 0x129   : > { %v1026_v29 = vadd.f32 %v1025_v8, %v1024_v32 }
 0x12a   : > { %v1056_v25 = vsel %vm352_vm0, %v1045_v37, 0.0  ;;  %v941_v54 = vadd.f32 %v927_v24, %v887_v6 }
 0x12b   : > { %v1057_v56 = vadd.f32 %v1056_v25, %v1055_v23  ;;  %v773_v7 = vpop.f32.mrf.mxu1 }
 0x12c   : > { %v995_v59 = vadd.f32 %v981_v47, %v941_v54  ;;  %v783_v5 = vadd.f32 %v773_v7, %v729_v35 }
 0x12d   : > { %v984_v58 = vpop.f32.mrf.mxu0 }
 0x12e   : > { %v1007_v44 = vadd.f32 %v1696_v2, %v995_v59 }
 0x12f   : > { %v876_v61 = vpop.f32.mrf.mxu2 }
 0x130   : > { %1015 = vst.msk [vmem:[%s1703_s12 + $0x28] sm:$0xff] %vm352_vm0, %v1007_v44  ;;  %v1027_v15 = vsel %vm352_vm0, %v1007_v44, 0.0  ;;  %v1046_v41 = vmul.f32 %v1007_v44, %v1007_v44  ;;  %v888_v63 = vadd.f32 %v876_v61, %v782_v34  ;;  %v930_v55 = vpop.f32.mrf.mxu3 }
 0x131   : > { %v1028_v1 = vadd.f32 %v1027_v15, %v1026_v29 }
 0x132   : > { %v1058_v42 = vsel %vm352_vm0, %v1046_v41, 0.0  ;;  %v942_v50 = vadd.f32 %v930_v55, %v888_v63 }
 0x133   : > { %v1059_v3 = vadd.f32 %v1058_v42, %v1057_v56 }
 0x134   : > { %v996_v4 = vadd.f32 %v984_v58, %v942_v50 }
 0x135   : > { %v987_v36 = vpop.f32.mrf.mxu0 }
 0x136   : > { %v1008_v52 = vadd.f32 %v1696_v2, %v996_v4 }
 0x137   : > { %v879_v28 = vpop.f32.mrf.mxu2 }
 0x138   : > { %1016 = vst.msk [vmem:[%s1703_s12 + $0x30] sm:$0xff] %vm352_vm0, %v1008_v52  ;;  %v1029_v33 = vsel %vm352_vm0, %v1008_v52, 0.0  ;;  %v1047_v57 = vmul.f32 %v1008_v52, %v1008_v52  ;;  %v889_v0 = vadd.f32 %v879_v28, %v783_v5  ;;  %v933_v9 = vpop.f32.mrf.mxu3 }
 0x139   : > { %v1030_v60 = vadd.f32 %v1029_v33, %v1028_v1 }
 0x13a   : > { %v1060_v10 = vsel %vm352_vm0, %v1047_v57, 0.0  ;;  %v943_v11 = vadd.f32 %v933_v9, %v889_v0 }
 0x13b   : > { %v1061_v12 = vadd.f32 %v1060_v10, %v1059_v3 }
 0x13c   : > { %v997_v49 = vadd.f32 %v987_v36, %v943_v11 }
 0x13e   : > { %v1009_v13 = vadd.f32 %v1696_v2, %v997_v49 }
 0x140   : > { %1017 = vst.msk [vmem:[%s1703_s12 + $0x38] sm:$0xff] %vm352_vm0, %v1009_v13  ;;  %v1031_v16 = vsel %vm352_vm0, %v1009_v13, 0.0  ;;  %v1048_v17 = vmul.f32 %v1009_v13, %v1009_v13 }
 0x141   : > { %v1032_v18 = vadd.f32 %v1031_v16, %v1030_v60 }
 0x142   : > { %v1062_v14 = vsel %vm352_vm0, %v1048_v17, 0.0 }
 0x143   : > { %v1033_v31 = vrot.slane %v1032_v18, 4  ;;  %v1063_v19 = vadd.f32 %v1062_v14, %v1061_v12 }
 0x145   : > { %v1034_v20 = vadd.f32 %v1033_v31, %v1032_v18  ;;  %v1064_v32 = vrot.slane %v1063_v19, 4 }
 0x147   : > { %v1035_v39 = vrot.slane %v1034_v20, 2  ;;  %v1065_v21 = vadd.f32 %v1064_v32, %v1063_v19 }
 0x149   : > { %v1036_v22 = vadd.f32 %v1035_v39, %v1034_v20  ;;  %v1066_v23 = vrot.slane %v1065_v21, 2 }
 0x14b   : > { %v1037_v26 = vrot.slane %v1036_v22, 1  ;;  %v1067_v2 = vadd.f32 %v1066_v23, %v1065_v21 }
 0x14d   : > { %v1038_v40 = vadd.f32 %v1037_v26, %v1036_v22  ;;  %v1068_v46 = vrot.slane %v1067_v2, 1 }
 0x14f   : > { %1040 = vst.msk [vmem:[%s292_s15] sm:$0x1] %vm1039_vm11, %v1038_v40  ;;  %v1069_v47 = vadd.f32 %v1068_v46, %v1067_v2 }
 0x151   : > { %1070 = vst.msk [vmem:[%s295_s18] sm:$0x1] %vm1039_vm11, %v1069_v47 }
 0x152 PF: > { %s18_s24 = sadd.s32 1, %s1290_s24  }
 0x153   : > { %p15_p4 = scmp.ge.s32.totalorder %s18_s24, 4  }
 0x155   :  { %17 = sbr.rel (!%p15_p4) target bundleno = 1 (0x1), region = 103 }

// kernel: down_block_forward.3
= control target key start
LH: loop header
LB: loop body
LE: loop exit
PB: predicated region body
PF: predicated region fallthrough
CT: control target
= control target key end

     0   :  { %s1305_s18 = smov 0   ;;  %s1787_s0 = inlined_call_operand.vmem [shape: f32[2,8,4,8,4], index: 0, kind: input, shape index: {}]   ;;  %s1788_s1 = inlined_call_operand.vmem [shape: f32[3,3,4,8], index: 1, kind: input, shape index: {}]   ;;  %s1789_s2 = inlined_call_operand.vmem [shape: f32[1,8], index: 2, kind: input, shape index: {}]   ;;  %s1790_s3 = inlined_call_operand.vmem [shape: f32[2,64,8], index: 3, kind: output, shape index: {0}]   ;;  %s1791_s4 = inlined_call_operand.vmem [shape: f32[2,1,8], index: 4, kind: output, shape index: {1}]   ;;  %s1792_s5 = inlined_call_operand.vmem [shape: f32[2,1,8], index: 5, kind: output, shape index: {2}]  }
   0x1 LB: > { %s1151_s19 = sadd.s32 4294967295, %s1272_s18   ;;  %p1155_p0 = scmp.ge.s32.totalorder %s1272_s18, 1  ;;  %s1272_s18 = sphi %s1305_s18, %s16_s18  }
   0x2   : > { %p192_p1 = scmp.lt.s32.totalorder %s1272_s18, 3 }
   0x4   : > { %p193_p2 = pnand %p1155_p0, %p192_p1 }
   0x5   : > { %p226_p3 = scmp.lt.s32.totalorder (!%p193_p2), %s1151_s19, 1 }
   0x6   : > { %196 = sbr.rel (%p193_p2) target bundleno = 338 (0x152), region = 32 }
   0xb   : > { %v1160_v0 = vld [vmem:[%s1788_s1 + $0xc] sm:$0xf]  ;;  %vm408_vm0 = vcmask 1043456   ;;  %vm298_vm1 = vcmask 31744   ;;  %v1274_v1 = vmov 0.0   ;;  %s1794_s19 = smov (!%p226_p3, %s1151_s19), 1  ;;  %v368_v19 = vlaneseq }
   0xc   : > { %1253 = vmatpush.msk.msra.mxu1 %vm408_vm0, %v1160_v0  ;;  %1254 = vmatpush.msk.msra.mxu2 %vm408_vm0, %v1160_v0  ;;  %305 = vst.msk [vmem:[#allocation2 + $0x30] sm:$0xff] %vm298_vm1, %v1274_v1  ;;  %v1179_v2 = vld [vmem:[%s1788_s1 + $0x18] sm:$0xf]  ;;  %v1189_v3 = vld [vmem:[%s1788_s1 + $0x4] sm:$0xf]  ;;  %s1251_s28 = sshll.u32 %s1794_s19, 8  ;;  %s238_s27 = scalar_lea.vmem %s1791_s4, %s1794_s19 }
   0xd   : > { %306 = vst.msk [vmem:[#allocation2 + $0x38] sm:$0xff] %vm298_vm1, %v1274_v1  ;;  %1255 = vmatpush.msk.msra.mxu3 %vm408_vm0, %v1160_v0  ;;  %v381_v4 = vld [vmem:[%s1788_s1] sm:$0xf]  ;;  %1161 = vmatpush.msk.msra.mxu0 %vm408_vm0, %v1160_v0  ;;  %s1346_s6 = scalar_lea.vmem %s1787_s0, %s1251_s28  ;;  %v1392_v35 = vshrl.u32 %v368_v19, 7  ;;  %v1199_v45 = vld [vmem:[%s1788_s1 + $0x10] sm:$0xf]  ;;  %s241_s30 = scalar_lea.vmem %s1792_s5, %s1794_s19 }
   0xe   : > { %1180 = vmatpush.msk.msrb.mxu2 %vm408_vm0, %v1179_v2  ;;  %299 = vst.msk [vmem:[#allocation2] sm:$0xff] %vm298_vm1, %v1274_v1  ;;  %1170 = vmatpush.msk.msrb.mxu1 %vm408_vm0, %v381_v4  ;;  %v250_v5 = vld [vmem:[%s1346_s6 + $0x40] sm:$0xff]  ;;  %v251_v6 = vld [vmem:[%s1346_s6 + $0x48] sm:$0xff]  ;;  %v252_v7 = vld [vmem:[%s1346_s6 + $0x50] sm:$0xff]  ;;  %s1252_s17 = sshll.u32 %s1794_s19, 6  ;;  %vm984_vm4 = vcmask 64512  }
   0xf   : > { %1190 = vmatpush.msk.msrb.mxu3 %vm408_vm0, %v1189_v3  ;;  %300 = vst.msk [vmem:[#allocation2 + $0x8] sm:$0xff] %vm298_vm1, %v1274_v1  ;;  %v253_v8 = vld [vmem:[%s1346_s6 + $0x58] sm:$0xff]  ;;  %v276_v9 = vmax.f32 %v250_v5, %v251_v6  ;;  %v258_v11 = vld [vmem:[%s1346_s6 + $0x80] sm:$0xff]  ;;  %v259_v12 = vld [vmem:[%s1346_s6 + $0x88] sm:$0xff]  ;;  %1200 = vmatpush.msk.msrb.mxu0 %vm408_vm0, %v1199_v45  ;;  %vm370_vm2 = vcmp.lt.s32.totalorder %v1392_v35, 1  ;;  %vm769_vm3 = vcmp.lt.s32.totalorder %v1392_v35, 7  ;;  %s1712_s24 = scalar_lea.vmem %s1790_s3, %s1252_s17 }
  0x10   : > { %301 = vst.msk [vmem:[#allocation2 + $0x10] sm:$0xff] %vm298_vm1, %v1274_v1  ;;  %v284_v10 = vmax.f32 %v252_v7, %v253_v8  ;;  %v260_v13 = vld [vmem:[%s1346_s6 + $0x90] sm:$0xff]  ;;  %v261_v14 = vld [vmem:[%s1346_s6 + $0x98] sm:$0xff]  ;;  %v266_v16 = vld [vmem:[%s1346_s6 + $0xc0] sm:$0xff]  ;;  %v278_v30 = vmax.f32 %v258_v11, %v259_v12  ;;  %vm1014_vm5 = vcmask 57344  }
  0x11   : > { %302 = vst.msk [vmem:[#allocation2 + $0x18] sm:$0xff] %vm298_vm1, %v1274_v1  ;;  %v267_v17 = vld [vmem:[%s1346_s6 + $0xc8] sm:$0xff]  ;;  %v268_v18 = vld [vmem:[%s1346_s6 + $0xd0] sm:$0xff]  ;;  %v269_v20 = vld [vmem:[%s1346_s6 + $0xd8] sm:$0xff]  ;;  %v286_v31 = vmax.f32 %v260_v13, %v261_v14 }
  0x12   : > { %303 = vst.msk [vmem:[#allocation2 + $0x20] sm:$0xff] %vm298_vm1, %v1274_v1  ;;  %v292_v15 = vmax.f32 %v276_v9, %v284_v10  ;;  %v254_v21 = vld [vmem:[%s1346_s6 + $0x60] sm:$0xff]  ;;  %v255_v22 = vld [vmem:[%s1346_s6 + $0x68] sm:$0xff]  ;;  %v256_v23 = vld [vmem:[%s1346_s6 + $0x70] sm:$0xff]  ;;  %v280_v36 = vmax.f32 %v266_v16, %v267_v17  ;;  %v288_v37 = vmax.f32 %v268_v18, %v269_v20 }
  0x13   : > { %304 = vst.msk [vmem:[#allocation2 + $0x28] sm:$0xff] %vm298_vm1, %v1274_v1  ;;  %v257_v24 = vld [vmem:[%s1346_s6 + $0x78] sm:$0xff]  ;;  %v262_v25 = vld [vmem:[%s1346_s6 + $0xa0] sm:$0xff]  ;;  %v263_v27 = vld [vmem:[%s1346_s6 + $0xa8] sm:$0xff]  ;;  %v277_v41 = vmax.f32 %v254_v21, %v255_v22  ;;  %v294_v50 = vmax.f32 %v278_v30, %v286_v31 }
  0x14   : > { %307 = vst.msk [vmem:[#allocation2 + $0x40] sm:$0xff] %vm298_vm1, %v1274_v1  ;;  %v1380_v26 = vld [vmem:[#allocation2 + $0x38] sm:$0xff]  ;;  %v264_v28 = vld [vmem:[%s1346_s6 + $0xb0] sm:$0xff]  ;;  %v242_v32 = vld [vmem:[%s1346_s6] sm:$0xff]  ;;  %v285_v42 = vmax.f32 %v256_v23, %v257_v24  ;;  %v279_v46 = vmax.f32 %v262_v25, %v263_v27  ;;  %v296_v57 = vmax.f32 %v280_v36, %v288_v37 }
  0x15   : > { %308 = vst.msk [vmem:[#allocation2 + $0x48] sm:$0xff] %vm298_vm1, %v1274_v1  ;;  %v265_v29 = vld [vmem:[%s1346_s6 + $0xb8] sm:$0xff]  ;;  %v243_v33 = vld [vmem:[%s1346_s6 + $0x8] sm:$0xff]  ;;  %v244_v34 = vld [vmem:[%s1346_s6 + $0x10] sm:$0xff]  ;;  %v361_v49 = vrot.slane %v1380_v26, 7 }
  0x16   : > { %309 = vst.msk [vmem:[#allocation2 + $0x50] sm:$0xff] %vm298_vm1, %v1274_v1  ;;  %v245_v38 = vld [vmem:[%s1346_s6 + $0x18] sm:$0xff]  ;;  %v270_v39 = vld [vmem:[%s1346_s6 + $0xe0] sm:$0xff]  ;;  %v271_v40 = vld [vmem:[%s1346_s6 + $0xe8] sm:$0xff]  ;;  %v287_v47 = vmax.f32 %v264_v28, %v265_v29  ;;  %v274_v51 = vmax.f32 %v242_v32, %v243_v33  ;;  %v293_v61 = vmax.f32 %v277_v41, %v285_v42 }
  0x17   : > { %322 = vst.msk [vmem:[#allocation2 + $0x30] sm:$0xff] %vm298_vm1, %v292_v15  ;;  %v272_v43 = vld [vmem:[%s1346_s6 + $0xf0] sm:$0xff]  ;;  %v273_v44 = vld [vmem:[%s1346_s6 + $0xf8] sm:$0xff]  ;;  %v246_v48 = vld [vmem:[%s1346_s6 + $0x20] sm:$0xff]  ;;  %v282_v52 = vmax.f32 %v244_v34, %v245_v38  ;;  %v281_v58 = vmax.f32 %v270_v39, %v271_v40 }
  0x18   : > { %310 = vst.msk [vmem:[#allocation2 + $0x58] sm:$0xff] %vm298_vm1, %v1274_v1  ;;  %v247_v53 = vld [vmem:[%s1346_s6 + $0x28] sm:$0xff]  ;;  %v248_v54 = vld [vmem:[%s1346_s6 + $0x30] sm:$0xff]  ;;  %v249_v55 = vld [vmem:[%s1346_s6 + $0x38] sm:$0xff]  ;;  %v289_v59 = vmax.f32 %v272_v43, %v273_v44  ;;  %v295_v0 = vmax.f32 %v279_v46, %v287_v47 }
  0x19   : > { %311 = vst.msk [vmem:[#allocation2 + $0x60] sm:$0xff] %vm298_vm1, %v1274_v1  ;;  %v275_v62 = vmax.f32 %v246_v48, %v247_v53  ;;  %v283_v63 = vmax.f32 %v248_v54, %v249_v55  ;;  %v1209_v2 = vld [vmem:[%s1788_s1 + $0x1c] sm:$0xf]  ;;  %v290_v4 = vmax.f32 %v274_v51, %v282_v52  ;;  %v1219_v19 = vld [vmem:[%s1788_s1 + $0x8] sm:$0xf]  ;;  %v328_v29 = vld [vmem:[#allocation2] sm:$0xff] }
  0x1a   : > { %312 = vst.msk [vmem:[#allocation2 + $0x68] sm:$0xff] %vm298_vm1, %v1274_v1  ;;  %v297_v5 = vmax.f32 %v281_v58, %v289_v59  ;;  %v1453_v12 = vld [vmem:[#allocation2 + $0x18] sm:$0xff]  ;;  %v1229_v25 = vld [vmem:[%s1788_s1 + $0x14] sm:$0xf]  ;;  %v329_v30 = vld [vmem:[#allocation2 + $0x8] sm:$0xff]  ;;  %v348_v41 = vrot.slane %v328_v29, 7 }
  0x1b   : > { %313 = vst.msk [vmem:[#allocation2 + $0x70] sm:$0xff] %vm298_vm1, %v1274_v1  ;;  %v359_v23 = vrot.slane %v1453_v12, 7  ;;  %v1239_v39 = vld [vmem:[%s1788_s1 + $0x20] sm:$0xf]  ;;  %v358_v42 = vrot.slane %v329_v30, 7  ;;  %v333_v44 = vld [vmem:[#allocation2 + $0x28] sm:$0xff] }
  0x1c   : > { %314 = vst.msk [vmem:[#allocation2 + $0x78] sm:$0xff] %vm298_vm1, %v1274_v1  ;;  %v1445_v8 = vld [vmem:[#allocation2 + $0x48] sm:$0xff]  ;;  %v759_v51 = vrot.slane %v329_v30, 1  ;;  %v749_v52 = vrot.slane %v328_v29, 1  ;;  %v760_v54 = vrot.slane %v1453_v12, 1 }
  0x1d   : > { %315 = vst.msk [vmem:[#allocation2 + $0x80] sm:$0xff] %vm298_vm1, %v1274_v1  ;;  %v362_v15 = vrot.slane %v1445_v8, 7  ;;  %v371_v47 = vsel %vm370_vm2, %v358_v42, %v348_v41 }
  0x1e   : > { %v1416_v56 = vld [vmem:[#allocation2 + $0x30] sm:$0xff]  ;;  %316 = vst.msk [vmem:[#allocation2 + $0x88] sm:$0xff] %vm298_vm1, %v1274_v1  ;;  %v770_v53 = vsel %vm769_vm3, %v749_v52, %v759_v51 }
  0x1f   : > { %v351_v60 = vrot.slane %v1416_v56, 7  ;;  %317 = vst.msk [vmem:[#allocation2 + $0x90] sm:$0xff] %vm298_vm1, %v1274_v1  ;;  %v1439_v6 = vld [vmem:[#allocation2 + $0x58] sm:$0xff] }
  0x20   : > { %318 = vst.msk [vmem:[#allocation2 + $0x98] sm:$0xff] %vm298_vm1, %v1274_v1  ;;  %v291_v1 = vmax.f32 %v275_v62, %v283_v63  ;;  %v363_v9 = vrot.slane %v1439_v6, 7 }
  0x21   : > { %v1431_v3 = vsel %vm370_vm2, %v361_v49, %v351_v60  ;;  %324 = vst.msk [vmem:[#allocation2 + $0x50] sm:$0xff] %vm298_vm1, %v294_v50  ;;  %v1462_v18 = vld [vmem:[#allocation2 + $0x68] sm:$0xff]  ;;  %v360_v49 = vrot.slane %v333_v44, 7 }
  0x22   : > { %1164 = vmatmul.msk.f32.vlgmr.msra.gmra.mxu1 %vm298_vm1, %v1431_v3  ;;  %326 = vst.msk [vmem:[#allocation2 + $0x70] sm:$0xff] %vm298_vm1, %v296_v57  ;;  %v364_v33 = vrot.slane %v1462_v18, 7 }
  0x23   : > { %323 = vst.msk [vmem:[#allocation2 + $0x40] sm:$0xff] %vm298_vm1, %v293_v61  ;;  %1210 = vmatpush.msk.msra.mxu1 %vm408_vm0, %v1209_v2  ;;  %v1442_v7 = vld [vmem:[#allocation2 + $0x78] sm:$0xff] }
  0x24   : > { %325 = vst.msk [vmem:[#allocation2 + $0x60] sm:$0xff] %vm298_vm1, %v295_v0  ;;  %v365_v11 = vrot.slane %v1442_v7, 7  ;;  %v761_v0 = vrot.slane %v333_v44, 1 }
  0x25   : > { %320 = vst.msk [vmem:[#allocation2 + $0x10] sm:$0xff] %vm298_vm1, %v290_v4  ;;  %v1475_v24 = vld [vmem:[#allocation2 + $0x88] sm:$0xff]  ;;  %v762_v4 = vrot.slane %v1380_v26, 1 }
  0x26   : > { %327 = vst.msk [vmem:[#allocation2 + $0x80] sm:$0xff] %vm298_vm1, %v297_v5  ;;  %v366_v38 = vrot.slane %v1475_v24, 7  ;;  %v1565_v58 = vld [vmem:[#allocation2 + $0x90] sm:$0xff] }
  0x27   : > { %321 = vst.msk [vmem:[#allocation2 + $0x20] sm:$0xff] %vm298_vm1, %v291_v1  ;;  %v1567_v59 = vld [vmem:[#allocation2 + $0x98] sm:$0xff]  ;;  %v357_v60 = vrot.slane %v1565_v58, 7 }
  0x28   : > { %v1450_v10 = vld [vmem:[#allocation2 + $0x50] sm:$0xff]  ;;  %v367_v61 = vrot.slane %v1567_v59, 7 }
  0x29   : > { %v353_v13 = vrot.slane %v1450_v10, 7  ;;  %v1456_v14 = vld [vmem:[#allocation2 + $0x70] sm:$0xff] }
  0x2a   : > { %v355_v16 = vrot.slane %v1456_v14, 7  ;;  %v1460_v17 = vld [vmem:[#allocation2 + $0x40] sm:$0xff]  ;;  %v380_v62 = vsel %vm370_vm2, %v367_v61, %v357_v60 }
  0x2b   : > { %v1469_v20 = vsel %vm370_vm2, %v363_v9, %v353_v13  ;;  %v352_v21 = vrot.slane %v1460_v17, 7  ;;  %v1472_v22 = vld [vmem:[#allocation2 + $0x60] sm:$0xff]  ;;  %v753_v1 = vrot.slane %v1460_v17, 1  ;;  %v763_v9 = vrot.slane %v1445_v8, 1 }
  0x2c   : > { %1166 = vmatmul.msk.f32.vlgmr.msra.gmra.mxu2 %vm298_vm1, %v1469_v20  ;;  %v1484_v27 = vsel %vm370_vm2, %v365_v11, %v355_v16  ;;  %v330_v28 = vld [vmem:[#allocation2 + $0x10] sm:$0xff]  ;;  %v354_v32 = vrot.slane %v1472_v22, 7  ;;  %v764_v11 = vrot.slane %v1439_v6, 1  ;;  %v755_v12 = vrot.slane %v1472_v22, 1 }
  0x2d   : > { %1168 = vmatmul.msk.f32.vlgmr.msra.gmra.mxu3 %vm298_vm1, %v1484_v27  ;;  %v375_v31 = vsel %vm370_vm2, %v362_v15, %v352_v21  ;;  %v349_v34 = vrot.slane %v330_v28, 7  ;;  %v1492_v36 = vld [vmem:[#allocation2 + $0x80] sm:$0xff]  ;;  %1220 = vmatpush.msk.msra.mxu2 %vm408_vm0, %v1219_v19  ;;  %v750_v55 = vrot.slane %v330_v28, 1  ;;  %v774_v26 = vsel %vm769_vm3, %v753_v1, %v763_v9 }
  0x2e   : > { %1165 = vmatmul.msk.f32.gmra.mxu1 %vm298_vm1, %v375_v31  ;;  %v356_v37 = vrot.slane %v1492_v36, 7  ;;  %1230 = vmatpush.msk.msra.mxu3 %vm408_vm0, %v1229_v25  ;;  %v1505_v43 = vld [vmem:[#allocation2 + $0x20] sm:$0xff]  ;;  %v377_v45 = vsel %vm370_vm2, %v364_v33, %v354_v32  ;;  %v765_v13 = vrot.slane %v1462_v18, 1  ;;  %v756_v15 = vrot.slane %v1456_v14, 1 }
  0x2f   : > { %v372_v40 = vsel %vm370_vm2, %v359_v23, %v349_v34  ;;  %v350_v48 = vrot.slane %v1505_v43, 7  ;;  %v771_v57 = vsel %vm769_vm3, %v750_v55, %v760_v54  ;;  %v751_v63 = vrot.slane %v1505_v43, 1 }
  0x30   : > { %1162 = vmatmul.msk.f32.vlgmr.msra.gmra.mxu0 %vm298_vm1, %v372_v40  ;;  %v379_v46 = vsel %vm370_vm2, %v366_v38, %v356_v37  ;;  %v776_v6 = vsel %vm769_vm3, %v755_v12, %v765_v13  ;;  %v766_v16 = vrot.slane %v1442_v7, 1  ;;  %v757_v18 = vrot.slane %v1492_v36, 1 }
  0x31   : > { %1240 = vmatpush.msk.msra.mxu0 %vm408_vm0, %v1239_v39  ;;  %v373_v50 = vsel %vm370_vm2, %v360_v49, %v350_v48  ;;  %v772_v2 = vsel %vm769_vm3, %v751_v63, %v761_v0  ;;  %v767_v19 = vrot.slane %v1475_v24, 1  ;;  %v758_v23 = vrot.slane %v1565_v58, 1 }
  0x32   : > { %v768_v24 = vrot.slane %v1567_v59, 1 }
  0x34   : > { %1167 = vmatmul.msk.f32.gmra.mxu2 %vm298_vm1, %v377_v45 }
  0x35   : > { %1169 = vmatmul.msk.f32.gmra.mxu3 %vm298_vm1, %v379_v46 }
  0x36   : > { %1171 = vmatmul.msk.f32.vlgmr.msrb.gmra.mxu1 %vm298_vm1, %v371_v47 }
  0x38   : > { %1163 = vmatmul.msk.f32.gmra.mxu0 %vm298_vm1, %v373_v50 }
  0x3c   : > { %1181 = vmatmul.msk.f32.vlgmr.msrb.gmra.mxu2 %vm298_vm1, %v373_v50 }
  0x3d   : > { %1191 = vmatmul.msk.f32.vlgmr.msrb.gmra.mxu3 %vm298_vm1, %v328_v29 }
  0x3e   : > { %1172 = vmatmul.msk.f32.gmra.mxu1 %vm298_vm1, %v372_v40 }
  0x40   : > { %1201 = vmatmul.msk.f32.vlgmr.msrb.gmra.mxu0 %vm298_vm1, %v330_v28 }
  0x44   : > { %1182 = vmatmul.msk.f32.gmra.mxu2 %vm298_vm1, %v1431_v3 }
  0x45   : > { %1192 = vmatmul.msk.f32.gmra.mxu3 %vm298_vm1, %v330_v28  ;;  %v779_v28 = vsel %vm769_vm3, %v758_v23, %v768_v24 }
  0x46   : > { %1173 = vmatmul.msk.f32.gmra.mxu1 %vm298_vm1, %v373_v50 }
  0x48   : > { %1202 = vmatmul.msk.f32.gmra.mxu0 %vm298_vm1, %v1505_v43 }
  0x4c   : > { %1183 = vmatmul.msk.f32.gmra.mxu2 %vm298_vm1, %v375_v31 }
  0x4d   : > { %1193 = vmatmul.msk.f32.gmra.mxu3 %vm298_vm1, %v1505_v43 }
  0x4e   : > { %1174 = vmatmul.msk.f32.gmra.mxu1 %vm298_vm1, %v1431_v3  ;;  %v752_v3 = vrot.slane %v1416_v56, 1 }
  0x50   : > { %1203 = vmatmul.msk.f32.gmra.mxu0 %vm298_vm1, %v1416_v56  ;;  %v773_v5 = vsel %vm769_vm3, %v752_v3, %v762_v4 }
  0x54   : > { %1184 = vmatmul.msk.f32.gmra.mxu2 %vm298_vm1, %v1469_v20 }
  0x55   : > { %1194 = vmatmul.msk.f32.gmra.mxu3 %vm298_vm1, %v1416_v56 }
  0x56   : > { %1175 = vmatmul.msk.f32.gmra.mxu1 %vm298_vm1, %v375_v31 }
  0x58   : > { %1204 = vmatmul.msk.f32.gmra.mxu0 %vm298_vm1, %v1460_v17 }
  0x5c   : > { %1185 = vmatmul.msk.f32.gmra.mxu2 %vm298_vm1, %v377_v45 }
  0x5d   : > { %1195 = vmatmul.msk.f32.gmra.mxu3 %vm298_vm1, %v1460_v17 }
  0x5e   : > { %1176 = vmatmul.msk.f32.gmra.mxu1 %vm298_vm1, %v1469_v20 }
  0x60   : > { %1205 = vmatmul.msk.f32.gmra.mxu0 %vm298_vm1, %v1450_v10 }
  0x64   : > { %1186 = vmatmul.msk.f32.gmra.mxu2 %vm298_vm1, %v1484_v27 }
  0x65   : > { %1196 = vmatmul.msk.f32.gmra.mxu3 %vm298_vm1, %v1450_v10 }
  0x66   : > { %1177 = vmatmul.msk.f32.gmra.mxu1 %vm298_vm1, %v377_v45 }
  0x68   : > { %1206 = vmatmul.msk.f32.gmra.mxu0 %vm298_vm1, %v1472_v22 }
  0x6c   : > { %1187 = vmatmul.msk.f32.gmra.mxu2 %vm298_vm1, %v379_v46 }
  0x6d   : > { %1197 = vmatmul.msk.f32.gmra.mxu3 %vm298_vm1, %v1472_v22 }
  0x6e   : > { %1178 = vmatmul.msk.f32.gmra.mxu1 %vm298_vm1, %v1484_v27 }
  0x70   : > { %1207 = vmatmul.msk.f32.gmra.mxu0 %vm298_vm1, %v1456_v14 }
  0x74   : > { %1188 = vmatmul.msk.f32.gmra.mxu2 %vm298_vm1, %v380_v62 }
  0x75   : > { %1198 = vmatmul.msk.f32.gmra.mxu3 %vm298_vm1, %v1456_v14 }
  0x76   : > { %1211 = vmatmul.msk.f32.vlgmr.msra.gmra.mxu1 %vm298_vm1, %v1505_v43 }
  0x78   : > { %1208 = vmatmul.msk.f32.gmra.mxu0 %vm298_vm1, %v1492_v36 }
  0x7c   : > { %1221 = vmatmul.msk.f32.vlgmr.msra.gmra.mxu2 %vm298_vm1, %v770_v53 }
  0x7d   : > { %1231 = vmatmul.msk.f32.vlgmr.msra.gmra.mxu3 %vm298_vm1, %v771_v57 }
  0x7e   : > { %1212 = vmatmul.msk.f32.gmra.mxu1 %vm298_vm1, %v1416_v56  ;;  %v754_v56 = vrot.slane %v1450_v10, 1 }
  0x80   : > { %1241 = vmatmul.msk.f32.vlgmr.msra.gmra.mxu0 %vm298_vm1, %v772_v2  ;;  %v775_v8 = vsel %vm769_vm3, %v754_v56, %v764_v11 }
  0x84   : > { %1222 = vmatmul.msk.f32.gmra.mxu2 %vm298_vm1, %v771_v57 }
  0x85   : > { %1232 = vmatmul.msk.f32.gmra.mxu3 %vm298_vm1, %v772_v2 }
  0x86   : > { %1213 = vmatmul.msk.f32.gmra.mxu1 %vm298_vm1, %v1460_v17  ;;  %v777_v17 = vsel %vm769_vm3, %v756_v15, %v766_v16  ;;  %v1707_v16 = vld [vmem:[%s1789_s2] ss:$0 sm:$0xff] }
  0x88   : > { %1242 = vmatmul.msk.f32.gmra.mxu0 %vm298_vm1, %v773_v5 }
  0x8c   : > { %1223 = vmatmul.msk.f32.gmra.mxu2 %vm298_vm1, %v772_v2 }
  0x8d   : > { %1233 = vmatmul.msk.f32.gmra.mxu3 %vm298_vm1, %v773_v5 }
  0x8e   : > { %1214 = vmatmul.msk.f32.gmra.mxu1 %vm298_vm1, %v1450_v10 }
  0x90   : > { %1243 = vmatmul.msk.f32.gmra.mxu0 %vm298_vm1, %v774_v26 }
  0x94   : > { %1224 = vmatmul.msk.f32.gmra.mxu2 %vm298_vm1, %v773_v5 }
  0x95   : > { %1234 = vmatmul.msk.f32.gmra.mxu3 %vm298_vm1, %v774_v26 }
  0x96   : > { %1215 = vmatmul.msk.f32.gmra.mxu1 %vm298_vm1, %v1472_v22 }
  0x98   : > { %1244 = vmatmul.msk.f32.gmra.mxu0 %vm298_vm1, %v775_v8 }
  0x9c   : > { %1225 = vmatmul.msk.f32.gmra.mxu2 %vm298_vm1, %v774_v26 }
  0x9d   : > { %1235 = vmatmul.msk.f32.gmra.mxu3 %vm298_vm1, %v775_v8 }
  0x9e   : > { %1216 = vmatmul.msk.f32.gmra.mxu1 %vm298_vm1, %v1456_v14  ;;  %v778_v14 = vsel %vm769_vm3, %v757_v18, %v767_v19 }
  0x9f   : > { %v1631_v10 = vpop.f32.mrf.mxu1 }
  0xa0   : > { %1245 = vmatmul.msk.f32.gmra.mxu0 %vm298_vm1, %v776_v6 }
  0xa4   : > { %1226 = vmatmul.msk.f32.gmra.mxu2 %vm298_vm1, %v775_v8 }
  0xa5   : > { %1236 = vmatmul.msk.f32.gmra.mxu3 %vm298_vm1, %v776_v6 }
  0xa6   : > { %1217 = vmatmul.msk.f32.gmra.mxu1 %vm298_vm1, %v1492_v36 }
  0xa8   : > { %1246 = vmatmul.msk.f32.gmra.mxu0 %vm298_vm1, %v777_v17 }
  0xab   : > { %v1644_v20 = vpop.f32.mrf.mxu1 }
  0xac   : > { %1227 = vmatmul.msk.f32.gmra.mxu2 %vm298_vm1, %v776_v6 }
  0xad   : > { %1237 = vmatmul.msk.f32.gmra.mxu3 %vm298_vm1, %v777_v17  ;;  %v429_v7 = vpop.f32.mrf.mxu0 }
  0xae   : > { %1218 = vmatmul.msk.f32.gmra.mxu1 %vm298_vm1, %v1565_v58 }
  0xaf   : > { %v1652_v21 = vpop.f32.mrf.mxu2 }
  0xb0   : > { %v1654_v22 = vpop.f32.mrf.mxu3  ;;  %1247 = vmatmul.msk.f32.gmra.mxu0 %vm298_vm1, %v778_v14 }
  0xb3   : > { %v476_v25 = vpop.f32.mrf.mxu1 }
  0xb4   : > { %1228 = vmatmul.msk.f32.gmra.mxu2 %vm298_vm1, %v777_v17  ;;  %v477_v60 = vadd.f32 %v476_v25, %v429_v7 }
  0xb5   : > { %1238 = vmatmul.msk.f32.gmra.mxu3 %vm298_vm1, %v778_v14  ;;  %v432_v27 = vpop.f32.mrf.mxu0 }
  0xb7   : > { %v1663_v29 = vpop.f32.mrf.mxu2 }
  0xb8   : > { %v1665_v30 = vpop.f32.mrf.mxu3  ;;  %1248 = vmatmul.msk.f32.gmra.mxu0 %vm298_vm1, %v779_v28 }
  0xbb   : > { %v479_v31 = vpop.f32.mrf.mxu1 }
  0xbc   : > { %v480_v4 = vadd.f32 %v479_v31, %v432_v27 }
  0xbd   : > { %v660_v32 = vpop.f32.mrf.mxu0 }
  0xbf   : > { %v525_v33 = vpop.f32.mrf.mxu2 }
  0xc0   : > { %v603_v34 = vpop.f32.mrf.mxu3  ;;  %v549_v62 = vadd.f32 %v525_v33, %v477_v60 }
  0xc2   : > { %v627_v2 = vadd.f32 %v603_v34, %v549_v62 }
  0xc3   : > { %v482_v36 = vpop.f32.mrf.mxu1 }
  0xc4   : > { %v684_v1 = vadd.f32 %v660_v32, %v627_v2  ;;  %v483_v6 = vadd.f32 %v482_v36, %v1631_v10 }
  0xc5   : > { %v663_v37 = vpop.f32.mrf.mxu0 }
  0xc7   : > { %v528_v38 = vpop.f32.mrf.mxu2 }
  0xc8   : > { %v606_v39 = vpop.f32.mrf.mxu3  ;;  %v550_v9 = vadd.f32 %v528_v38, %v480_v4 }
  0xca   : > { %v628_v8 = vadd.f32 %v606_v39, %v550_v9 }
  0xcb   : > { %v485_v40 = vpop.f32.mrf.mxu1 }
  0xcc   : > { %v685_v18 = vadd.f32 %v663_v37, %v628_v8  ;;  %v486_v31 = vadd.f32 %v485_v40, %v1644_v20 }
  0xcd   : > { %v666_v41 = vpop.f32.mrf.mxu0 }
  0xcf   : > { %v531_v42 = vpop.f32.mrf.mxu2 }
  0xd0   : > { %v609_v43 = vpop.f32.mrf.mxu3  ;;  %v551_v19 = vadd.f32 %v531_v42, %v483_v6 }
  0xd2   : > { %v629_v25 = vadd.f32 %v609_v43, %v551_v19 }
  0xd3   : > { %v1668_v35 = vpop.f32.mrf.mxu1 }
  0xd4   : > { %v686_v36 = vadd.f32 %v666_v41, %v629_v25  ;;  %v489_v41 = vadd.f32 %v1668_v35, %v1652_v21 }
  0xd5   : > { %v1670_v44 = vpop.f32.mrf.mxu0 }
  0xd7   : > { %v534_v45 = vpop.f32.mrf.mxu2 }
  0xd8   : > { %v612_v46 = vpop.f32.mrf.mxu3  ;;  %v552_v33 = vadd.f32 %v534_v45, %v486_v31 }
  0xdb   : > { %v1672_v47 = vpop.f32.mrf.mxu1 }
  0xdd   : > { %v1674_v48 = vpop.f32.mrf.mxu0 }
  0xdf   : > { %v1676_v49 = vpop.f32.mrf.mxu2 }
  0xe0   : > { %v1678_v50 = vpop.f32.mrf.mxu3 }
  0xe3   : > { %v1680_v51 = vpop.f32.mrf.mxu1 }
  0xe5   : > { %v1682_v52 = vpop.f32.mrf.mxu0 }
  0xe7   : > { %v1684_v53 = vpop.f32.mrf.mxu2 }
  0xe8   : > { %v1686_v54 = vpop.f32.mrf.mxu3 }
  0xeb   : > { %v1688_v55 = vpop.f32.mrf.mxu1 }
  0xed   : > { %v1690_v57 = vpop.f32.mrf.mxu0 }
  0xef   : > { %v1692_v58 = vpop.f32.mrf.mxu2 }
  0xf0   : > { %v1694_v59 = vpop.f32.mrf.mxu3 }
  0xf3   : > { %v717_v61 = vpop.f32.mrf.mxu1 }
  0xf4   : > { %v741_v56 = vadd.f32 %v717_v61, %v684_v1  ;;  %v630_v61 = vadd.f32 %v612_v46, %v552_v33 }
  0xf5   : > { %v1696_v63 = vpop.f32.mrf.mxu0 }
  0xf7   : > { %v1698_v0 = vpop.f32.mrf.mxu2 }
  0xf8   : > { %v1700_v3 = vpop.f32.mrf.mxu3 }
  0xfb   : > { %v720_v5 = vpop.f32.mrf.mxu1 }
  0xfc   : > { %v742_v10 = vadd.f32 %v720_v5, %v685_v18 }
  0xfd   : > { %v940_v26 = vpop.f32.mrf.mxu0 }
  0xff   : > { %v826_v11 = vpop.f32.mrf.mxu2 }
 0x100   : > { %v850_v12 = vadd.f32 %v826_v11, %v741_v56  ;;  %v883_v13 = vpop.f32.mrf.mxu3  ;;  %v553_v56 = vadd.f32 %v1676_v49, %v489_v41  ;;  %v492_v49 = vadd.f32 %v1672_v47, %v1663_v29 }
 0x102   : > { %v907_v15 = vadd.f32 %v883_v13, %v850_v12 }
 0x103   : > { %v723_v17 = vpop.f32.mrf.mxu1 }
 0x104   : > { %v964_v7 = vadd.f32 %v940_v26, %v907_v15  ;;  %v743_v42 = vadd.f32 %v723_v17, %v686_v36  ;;  %v687_v26 = vadd.f32 %v1670_v44, %v630_v61  ;;  %v631_v17 = vadd.f32 %v1678_v50, %v553_v56 }
 0x105   : > { %v943_v14 = vpop.f32.mrf.mxu0  ;;  %v554_v50 = vadd.f32 %v1684_v53, %v492_v49  ;;  %v495_v53 = vadd.f32 %v1680_v51, %v1654_v22 }
 0x106   : > { %v976_v23 = vadd.f32 %v1707_v16, %v964_v7 }
 0x107   : > { %v829_v24 = vpop.f32.mrf.mxu2  ;;  %v632_v33 = vadd.f32 %v1686_v54, %v554_v50  ;;  %v555_v54 = vadd.f32 %v1692_v58, %v495_v53  ;;  %v498_v58 = vadd.f32 %v1688_v55, %v1665_v30 }
 0x108   : > { %985 = vst.msk [vmem:[%s1712_s24] sm:$0xff] %vm984_vm4, %v976_v23  ;;  %v851_v27 = vadd.f32 %v829_v24, %v742_v10  ;;  %v886_v28 = vpop.f32.mrf.mxu3  ;;  %v1016_v39 = vmul.f32 %v976_v23, %v976_v23  ;;  %v993_v43 = vsel %vm984_vm4, %v976_v23, 0.0  ;;  %v688_v23 = vadd.f32 %v1674_v48, %v631_v17 }
 0x10a   : > { %v908_v32 = vadd.f32 %v886_v28, %v851_v27  ;;  %v1024_v5 = vsel %vm984_vm4, %v1016_v39, 0.0 }
 0x10b   : > { %v726_v34 = vpop.f32.mrf.mxu1 }
 0x10c   : > { %v965_v37 = vadd.f32 %v943_v14, %v908_v32  ;;  %v744_v13 = vadd.f32 %v726_v34, %v687_v26 }
 0x10d   : > { %v946_v38 = vpop.f32.mrf.mxu0 }
 0x10e   : > { %v977_v60 = vadd.f32 %v1707_v16, %v965_v37 }
 0x10f   : > { %v832_v62 = vpop.f32.mrf.mxu2 }
 0x110   : > { %986 = vst.msk [vmem:[%s1712_s24 + $0x8] sm:$0xff] %vm984_vm4, %v977_v60  ;;  %v994_v2 = vsel %vm984_vm4, %v977_v60, 0.0  ;;  %v1017_v4 = vmul.f32 %v977_v60, %v977_v60  ;;  %v852_v20 = vadd.f32 %v832_v62, %v743_v42  ;;  %v889_v40 = vpop.f32.mrf.mxu3  ;;  %v689_v42 = vadd.f32 %v1682_v52, %v632_v33 }
 0x111   : > { %v995_v45 = vadd.f32 %v994_v2, %v993_v43 }
 0x112   : > { %v1025_v1 = vsel %vm984_vm4, %v1017_v4, 0.0  ;;  %v909_v46 = vadd.f32 %v889_v40, %v852_v20  ;;  %v633_v4 = vadd.f32 %v1694_v59, %v555_v54  ;;  %v556_v59 = vadd.f32 %v1698_v0, %v498_v58 }
 0x113   : > { %v1026_v9 = vadd.f32 %v1025_v1, %v1024_v5  ;;  %v729_v8 = vpop.f32.mrf.mxu1 }
 0x114   : > { %v966_v11 = vadd.f32 %v946_v38, %v909_v46  ;;  %v745_v27 = vadd.f32 %v729_v8, %v688_v23  ;;  %v690_v46 = vadd.f32 %v1690_v57, %v633_v4 }
 0x115   : > { %v949_v12 = vpop.f32.mrf.mxu0 }
 0x116   : > { %v978_v6 = vadd.f32 %v1707_v16, %v966_v11 }
 0x117   : > { %v835_v15 = vpop.f32.mrf.mxu2 }
 0x118   : > { %987 = vst.msk [vmem:[%s1712_s24 + $0x10] sm:$0xff] %vm984_vm4, %v978_v6  ;;  %v996_v21 = vsel %vm984_vm4, %v978_v6, 0.0  ;;  %v1018_v35 = vmul.f32 %v978_v6, %v978_v6  ;;  %v853_v18 = vadd.f32 %v835_v15, %v744_v13  ;;  %v892_v19 = vpop.f32.mrf.mxu3 }
 0x119   : > { %v997_v44 = vadd.f32 %v996_v21, %v995_v45 }
 0x11a   : > { %v1027_v7 = vsel %vm984_vm4, %v1018_v35, 0.0  ;;  %v910_v14 = vadd.f32 %v892_v19, %v853_v18 }
 0x11b   : > { %v1028_v10 = vadd.f32 %v1027_v7, %v1026_v9  ;;  %v732_v32 = vpop.f32.mrf.mxu1 }
 0x11c   : > { %v967_v24 = vadd.f32 %v949_v12, %v910_v14  ;;  %v746_v62 = vadd.f32 %v732_v32, %v689_v42  ;;  %v634_v12 = vadd.f32 %v1700_v3, %v556_v59 }
 0x11d   : > { %v952_v25 = vpop.f32.mrf.mxu0 }
 0x11e   : > { %v979_v28 = vadd.f32 %v1707_v16, %v967_v24  ;;  %v691_v35 = vadd.f32 %v1696_v63, %v634_v12 }
 0x11f   : > { %v838_v31 = vpop.f32.mrf.mxu2 }
 0x120   : > { %988 = vst.msk [vmem:[%s1712_s24 + $0x18] sm:$0xff] %vm984_vm4, %v979_v28  ;;  %v998_v29 = vsel %vm984_vm4, %v979_v28, 0.0  ;;  %v1019_v47 = vmul.f32 %v979_v28, %v979_v28  ;;  %v854_v34 = vadd.f32 %v838_v31, %v745_v27  ;;  %v895_v36 = vpop.f32.mrf.mxu3 }
 0x121   : > { %v999_v48 = vadd.f32 %v998_v29, %v997_v44 }
 0x122   : > { %v1029_v37 = vsel %vm984_vm4, %v1019_v47, 0.0  ;;  %v911_v38 = vadd.f32 %v895_v36, %v854_v34 }
 0x123   : > { %v1030_v39 = vadd.f32 %v1029_v37, %v1028_v10  ;;  %v735_v52 = vpop.f32.mrf.mxu1 }
 0x124   : > { %v968_v60 = vadd.f32 %v952_v25, %v911_v38  ;;  %v747_v26 = vadd.f32 %v735_v52, %v690_v46 }
 0x125   : > { %v955_v61 = vpop.f32.mrf.mxu0 }
 0x126   : > { %v980_v43 = vadd.f32 %v1707_v16, %v968_v60 }
 0x127   : > { %v841_v2 = vpop.f32.mrf.mxu2 }
 0x128   : > { %989 = vst.msk [vmem:[%s1712_s24 + $0x20] sm:$0xff] %vm984_vm4, %v980_v43  ;;  %v1000_v22 = vsel %vm984_vm4, %v980_v43, 0.0  ;;  %v1020_v51 = vmul.f32 %v980_v43, %v980_v43  ;;  %v855_v20 = vadd.f32 %v841_v2, %v746_v62  ;;  %v898_v40 = vpop.f32.mrf.mxu3 }
 0x129   : > { %v1001_v45 = vadd.f32 %v1000_v22, %v999_v48 }
 0x12a   : > { %v1031_v41 = vsel %vm984_vm4, %v1020_v51, 0.0  ;;  %v912_v5 = vadd.f32 %v898_v40, %v855_v20 }
 0x12b   : > { %v1032_v1 = vadd.f32 %v1031_v41, %v1030_v39  ;;  %v738_v21 = vpop.f32.mrf.mxu1 }
 0x12c   : > { %v969_v9 = vadd.f32 %v955_v61, %v912_v5  ;;  %v748_v19 = vadd.f32 %v738_v21, %v691_v35 }
 0x12d   : > { %v958_v8 = vpop.f32.mrf.mxu0 }
 0x12e   : > { %v981_v56 = vadd.f32 %v1707_v16, %v969_v9 }
 0x12f   : > { %v844_v11 = vpop.f32.mrf.mxu2 }
 0x130   : > { %990 = vst.msk [vmem:[%s1712_s24 + $0x28] sm:$0xff] %vm984_vm4, %v981_v56  ;;  %v1002_v30 = vsel %vm984_vm4, %v981_v56, 0.0  ;;  %v1021_v55 = vmul.f32 %v981_v56, %v981_v56  ;;  %v856_v13 = vadd.f32 %v844_v11, %v747_v26  ;;  %v901_v6 = vpop.f32.mrf.mxu3 }
 0x131   : > { %v1003_v15 = vadd.f32 %v1002_v30, %v1001_v45 }
 0x132   : > { %v1033_v57 = vsel %vm984_vm4, %v1021_v55, 0.0  ;;  %v913_v0 = vadd.f32 %v901_v6, %v856_v13 }
 0x133   : > { %v1034_v17 = vadd.f32 %v1033_v57, %v1032_v1 }
 0x134   : > { %v970_v18 = vadd.f32 %v958_v8, %v913_v0 }
 0x135   : > { %v961_v50 = vpop.f32.mrf.mxu0 }
 0x136   : > { %v982_v3 = vadd.f32 %v1707_v16, %v970_v18 }
 0x137   : > { %v847_v44 = vpop.f32.mrf.mxu2 }
 0x138   : > { %991 = vst.msk [vmem:[%s1712_s24 + $0x30] sm:$0xff] %vm984_vm4, %v982_v3  ;;  %v1004_v49 = vsel %vm984_vm4, %v982_v3, 0.0  ;;  %v1022_v7 = vmul.f32 %v982_v3, %v982_v3  ;;  %v857_v14 = vadd.f32 %v847_v44, %v748_v19  ;;  %v904_v10 = vpop.f32.mrf.mxu3 }
 0x139   : > { %v1005_v23 = vadd.f32 %v1004_v49, %v1003_v15 }
 0x13a   : > { %v1035_v24 = vsel %vm984_vm4, %v1022_v7, 0.0  ;;  %v914_v25 = vadd.f32 %v904_v10, %v857_v14 }
 0x13b   : > { %v1036_v27 = vadd.f32 %v1035_v24, %v1034_v17 }
 0x13c   : > { %v971_v63 = vadd.f32 %v961_v50, %v914_v25 }
 0x13e   : > { %v983_v28 = vadd.f32 %v1707_v16, %v971_v63 }
 0x140   : > { %992 = vst.msk [vmem:[%s1712_s24 + $0x38] sm:$0xff] %vm984_vm4, %v983_v28  ;;  %v1006_v31 = vsel %vm984_vm4, %v983_v28, 0.0  ;;  %v1023_v32 = vmul.f32 %v983_v28, %v983_v28 }
 0x141   : > { %v1007_v33 = vadd.f32 %v1006_v31, %v1005_v23 }
 0x142   : > { %v1037_v29 = vsel %vm984_vm4, %v1023_v32, 0.0 }
 0x143   : > { %v1008_v47 = vrot.slane %v1007_v33, 4  ;;  %v1038_v34 = vadd.f32 %v1037_v29, %v1036_v27 }
 0x145   : > { %v1009_v36 = vadd.f32 %v1008_v47, %v1007_v33  ;;  %v1039_v48 = vrot.slane %v1038_v34, 4 }
 0x147   : > { %v1010_v53 = vrot.slane %v1009_v36, 2  ;;  %v1040_v37 = vadd.f32 %v1039_v48, %v1038_v34 }
 0x149   : > { %v1011_v38 = vadd.f32 %v1010_v53, %v1009_v36  ;;  %v1041_v39 = vrot.slane %v1040_v37, 2 }
 0x14b   : > { %v1012_v42 = vrot.slane %v1011_v38, 1  ;;  %v1042_v16 = vadd.f32 %v1041_v39, %v1040_v37 }
 0x14d   : > { %v1013_v54 = vadd.f32 %v1012_v42, %v1011_v38  ;;  %v1043_v60 = vrot.slane %v1042_v16, 1 }
 0x14f   : > { %1015 = vst.msk [vmem:[%s238_s27] sm:$0x1] %vm1014_vm5, %v1013_v54  ;;  %v1044_v61 = vadd.f32 %v1043_v60, %v1042_v16 }
 0x151   : > { %1045 = vst.msk [vmem:[%s241_s30] sm:$0x1] %vm1014_vm5, %v1044_v61 }
 0x152 PF: > { %s16_s18 = sadd.s32 1, %s1272_s18  }
 0x153   : > { %p13_p4 = scmp.ge.s32.totalorder %s16_s18, 4  }
 0x155   :  { %15 = sbr.rel (!%p13_p4) target bundleno = 1 (0x1), region = 95 }

</bundles_post_ra>
